<compile_context>
chip_gen: v5e
topology: v5e:2x2
jax: 0.10.0
libtpu: 0.0.40
codegen_flags: <defaults>
</compile_context>

<pallas_src>
import functools

import jax
import jax.numpy as jnp
from jax.experimental import pallas as pl
from jax.experimental.pallas import tpu as pltpu


# ----------------------------- fused model kernel ----------------------------
def fused_gru_kernel(*refs, num_layers, seq_len, batch, hidden_size):
    """Whole RecModel_gru forward in one kernel invocation.

    refs layout (inputs, then output, then scratch):
      x2d                         (S*B, F)
      per layer l in [0, L):
        w_ihT_l                   (in_l, 3H)   pre-transposed
        w_hhT_l                   (H, 3H)      pre-transposed
        b_ih_l                    (1, 3H)
        b_hh_l                    (1, 3H)
      lin_wT                      (H, C)       pre-transposed
      lin_b                       (1, C)
      out                         (L*B, C)     output
      seq_scr                     (S*B, H)     VMEM scratch: inter-layer activation
      hid_scr                     (L*B, H)     VMEM scratch: final hidden per layer
    """
    H, B, S, L = hidden_size, batch, seq_len, num_layers

    x_ref = refs[0]
    layer_refs = [refs[1 + 4 * l: 1 + 4 * (l + 1)] for l in range(L)]
    lin_w_ref = refs[1 + 4 * L]
    lin_b_ref = refs[2 + 4 * L]
    out_ref = refs[3 + 4 * L]
    seq_scr = refs[4 + 4 * L]
    hid_scr = refs[5 + 4 * L]

    layer_in = x_ref[...]                                    # (S*B, in0), f32

    for l in range(L):
        w_ihT_ref, w_hhT_ref, b_ih_ref, b_hh_ref = layer_refs[l]
        w_hhT = w_hhT_ref[...]                               # (H, 3H)

        # Hoisted input projection: one matmul for ALL time steps, b_ih folded in.
        gi_all = (jnp.dot(layer_in, w_ihT_ref[...],
                          preferred_element_type=jnp.float32)
                  + b_ih_ref[...])                           # (S*B, 3H)
        # Hoist the hidden-bias broadcast out of the serial loop.
        b_hh = jnp.broadcast_to(b_hh_ref[...], (B, 3 * H))   # (B, 3H)

        h = jnp.zeros((B, H), jnp.float32)
        for t in range(S):   # static unroll: the recurrence is the critical path
            gi = gi_all[t * B:(t + 1) * B, :]                # (B, 3H)
            gh = jnp.dot(h, w_hhT,
                         preferred_element_type=jnp.float32) + b_hh
            # PyTorch gate order: r, z, n
            r = jax.nn.sigmoid(gi[:, :H] + gh[:, :H])
            z = jax.nn.sigmoid(gi[:, H:2 * H] + gh[:, H:2 * H])
            n = jnp.tanh(gi[:, 2 * H:] + r * gh[:, 2 * H:])
            h = (1.0 - z) * n + z * h
            if l < L - 1:
                seq_scr[t * B:(t + 1) * B, :] = h            # next layer's input, VMEM only

        hid_scr[l * B:(l + 1) * B, :] = h                    # final hidden of layer l
        if l < L - 1:
            layer_in = seq_scr[...]                          # (S*B, H)

    # Linear epilogue on the stacked final hidden states -> single HBM write.
    out_ref[...] = (jnp.dot(hid_scr[...], lin_w_ref[...],
                            preferred_element_type=jnp.float32)
                    + lin_b_ref[...]).astype(out_ref.dtype)


# --------------------------------- wrapper -----------------------------------
def rec_model_gru_forward(x_bsf, params):
    """Mirrors RecModel_gru.forward (batch_first=True, dropout=0 at inference).

    Returns linear(hidden) with shape (num_layers, batch, n_classes), float32.
    """
    B, S, F = x_bsf.shape
    L = len(params["gru"])
    H = params["gru"][0][1].shape[1]
    C = params["lin_w"].shape[0]

    # batch_first -> (S, B, F) -> flatten (time, batch) for the hoisted projection.
    x2d = jnp.transpose(x_bsf, (1, 0, 2)).reshape(S * B, F).astype(jnp.float32)

    inputs = [x2d]
    in_specs = [pl.BlockSpec((S * B, F), lambda i: (0, 0))]
    for (w_ih, w_hh, b_ih, b_hh) in params["gru"]:
        in_size = w_ih.shape[1]
        # Pre-transpose once, off the hot path (no in-kernel .T).
        inputs += [w_ih.T, w_hh.T,
                   b_ih.reshape(1, 3 * H), b_hh.reshape(1, 3 * H)]
        in_specs += [
            pl.BlockSpec((in_size, 3 * H), lambda i: (0, 0)),
            pl.BlockSpec((H, 3 * H), lambda i: (0, 0)),
            pl.BlockSpec((1, 3 * H), lambda i: (0, 0)),
            pl.BlockSpec((1, 3 * H), lambda i: (0, 0)),
        ]
    inputs += [params["lin_w"].T, params["lin_b"].reshape(1, C)]
    in_specs += [pl.BlockSpec((H, C), lambda i: (0, 0)),
                 pl.BlockSpec((1, C), lambda i: (0, 0))]

    kernel = functools.partial(fused_gru_kernel, num_layers=L,
                               seq_len=S, batch=B, hidden_size=H)

    out2d = pl.pallas_call(
        kernel,
        out_shape=jax.ShapeDtypeStruct((L * B, C), jnp.float32),
        grid_spec=pltpu.PrefetchScalarGridSpec(
            num_scalar_prefetch=0,
            grid=(1,),                     # single invocation: everything fused
            in_specs=in_specs,
            out_specs=pl.BlockSpec((L * B, C), lambda i: (0, 0)),
            scratch_shapes=[
                pltpu.VMEM((S * B, H), jnp.float32),   # inter-layer activation
                pltpu.VMEM((L * B, H), jnp.float32),   # stacked final hiddens
            ],
        ),
        compiler_params=pltpu.CompilerParams(
            dimension_semantics=("arbitrary",)),
    )(*inputs)
    return out2d.reshape(L, B, C)


# ----------------------------- pure-JAX reference ----------------------------
def gru_ref(x_bsf, params):
    x = jnp.transpose(x_bsf, (1, 0, 2)).astype(jnp.float32)
    hiddens = []
    layer_in = x
    for (w_ih, w_hh, b_ih, b_hh) in params["gru"]:
        H = w_hh.shape[1]
        B = x.shape[1]
        h = jnp.zeros((B, H), jnp.float32)
        outs = []
        for t in range(layer_in.shape[0]):
            gi = layer_in[t] @ w_ih.T + b_ih
            gh = h @ w_hh.T + b_hh
            r = jax.nn.sigmoid(gi[:, :H] + gh[:, :H])
            z = jax.nn.sigmoid(gi[:, H:2 * H] + gh[:, H:2 * H])
            n = jnp.tanh(gi[:, 2 * H:] + r * gh[:, 2 * H:])
            h = (1.0 - z) * n + z * h
            outs.append(h)
        layer_in = jnp.stack(outs, axis=0)
        hiddens.append(h)
    hidden = jnp.stack(hiddens, axis=0)
    return hidden @ params["lin_w"].T + params["lin_b"]


# ----------------------------------- main -------------------------------------
def init_params(key, n_features, n_classes, hidden_size, num_layer):
    bound = 1.0 / jnp.sqrt(hidden_size)
    gru_params = []
    in_size = n_features
    for _ in range(num_layer):
        key, k1, k2, k3, k4 = jax.random.split(key, 5)
        w_ih = jax.random.uniform(k1, (3 * hidden_size, in_size),
                                  jnp.float32, -bound, bound)
        w_hh = jax.random.uniform(k2, (3 * hidden_size, hidden_size),
                                  jnp.float32, -bound, bound)
        b_ih = jax.random.uniform(k3, (3 * hidden_size,), jnp.float32, -bound, bound)
        b_hh = jax.random.uniform(k4, (3 * hidden_size,), jnp.float32, -bound, bound)
        gru_params.append((w_ih, w_hh, b_ih, b_hh))
        in_size = hidden_size
    key, k5, k6 = jax.random.split(key, 3)
    lin_w = jax.random.uniform(k5, (n_classes, hidden_size),
                               jnp.float32, -bound, bound)
    lin_b = jax.random.uniform(k6, (n_classes,), jnp.float32, -bound, bound)
    return {"gru": gru_params, "lin_w": lin_w, "lin_b": lin_b}


if __name__ == "__main__":
    batch, seq = 2, 8
    n_features, n_classes, hidden_size, num_layer = 4, 5, 32, 2

    key = jax.random.PRNGKey(0)
    key, kx = jax.random.split(key)
    x = jax.random.normal(kx, (batch, seq, n_features), jnp.float32)
    params = init_params(key, n_features, n_classes, hidden_size, num_layer)

    out = rec_model_gru_forward(x, params)       # (num_layer, batch, n_classes)
    out = jax.block_until_ready(out)

    ref = gru_ref(x, params)
    assert out.shape == (num_layer, batch, n_classes)
    assert jnp.allclose(out, ref, atol=1e-4, rtol=1e-4)

    print("KERNEL_OK")
</pallas_src>

<mosaic_0001>
module attributes {stable_mosaic.version = 11 : i64} {
  func.func @fused_gru_kernel(%arg0: i32, %arg1: memref<16x4xf32, #tpu.memory_space<vmem>>, %arg2: memref<4x96xf32, #tpu.memory_space<vmem>>, %arg3: memref<32x96xf32, #tpu.memory_space<vmem>>, %arg4: memref<1x96xf32, #tpu.memory_space<vmem>>, %arg5: memref<1x96xf32, #tpu.memory_space<vmem>>, %arg6: memref<32x96xf32, #tpu.memory_space<vmem>>, %arg7: memref<32x96xf32, #tpu.memory_space<vmem>>, %arg8: memref<1x96xf32, #tpu.memory_space<vmem>>, %arg9: memref<1x96xf32, #tpu.memory_space<vmem>>, %arg10: memref<32x5xf32, #tpu.memory_space<vmem>>, %arg11: memref<1x5xf32, #tpu.memory_space<vmem>>, %arg12: memref<4x5xf32, #tpu.memory_space<vmem>>, %arg13: memref<16x32xf32, #tpu.memory_space<vmem>>, %arg14: memref<4x32xf32, #tpu.memory_space<vmem>>) attributes {dimension_semantics = [#tpu.dimension_semantics<arbitrary>], iteration_bounds = array<i64: 1>, scalar_prefetch = 0 : i64, scratch_operands = 2 : i64, tpu.core_type = #tpu.core_type<tc>, window_params = [{pipeline_mode = #tpu.pipeline_mode<synchronous>, transform_indices = @transform_0, window_bounds = array<i64: 16, 4>}, {pipeline_mode = #tpu.pipeline_mode<synchronous>, transform_indices = @transform_1, window_bounds = array<i64: 4, 96>}, {pipeline_mode = #tpu.pipeline_mode<synchronous>, transform_indices = @transform_2, window_bounds = array<i64: 32, 96>}, {pipeline_mode = #tpu.pipeline_mode<synchronous>, transform_indices = @transform_3, window_bounds = array<i64: 1, 96>}, {pipeline_mode = #tpu.pipeline_mode<synchronous>, transform_indices = @transform_4, window_bounds = array<i64: 1, 96>}, {pipeline_mode = #tpu.pipeline_mode<synchronous>, transform_indices = @transform_5, window_bounds = array<i64: 32, 96>}, {pipeline_mode = #tpu.pipeline_mode<synchronous>, transform_indices = @transform_6, window_bounds = array<i64: 32, 96>}, {pipeline_mode = #tpu.pipeline_mode<synchronous>, transform_indices = @transform_7, window_bounds = array<i64: 1, 96>}, {pipeline_mode = #tpu.pipeline_mode<synchronous>, transform_indices = @transform_8, window_bounds = array<i64: 1, 96>}, {pipeline_mode = #tpu.pipeline_mode<synchronous>, transform_indices = @transform_9, window_bounds = array<i64: 32, 5>}, {pipeline_mode = #tpu.pipeline_mode<synchronous>, transform_indices = @transform_10, window_bounds = array<i64: 1, 5>}, {pipeline_mode = #tpu.pipeline_mode<synchronous>, transform_indices = @transform_11, window_bounds = array<i64: 4, 5>}]} {
    %c0 = arith.constant 0 : index
    %c0_0 = arith.constant 0 : index
    %0 = vector.load %arg1[%c0, %c0_0] : memref<16x4xf32, #tpu.memory_space<vmem>>, vector<16x4xf32>
    %c0_1 = arith.constant 0 : index
    %c0_2 = arith.constant 0 : index
    %1 = vector.load %arg3[%c0_1, %c0_2] : memref<32x96xf32, #tpu.memory_space<vmem>>, vector<32x96xf32>
    %c0_3 = arith.constant 0 : index
    %c0_4 = arith.constant 0 : index
    %2 = vector.load %arg2[%c0_3, %c0_4] : memref<4x96xf32, #tpu.memory_space<vmem>>, vector<4x96xf32>
    %cst = arith.constant dense<0.000000e+00> : vector<16x96xf32>
    %3 = tpu.matmul %0, %2, %cst {dimension_numbers = #tpu.dot_dimension_numbers<[1], [0], [0], [1], [0, 0, 1, 1], [], []>} : vector<16x4xf32>, vector<4x96xf32>, vector<16x96xf32> -> vector<16x96xf32>
    %c0_5 = arith.constant 0 : index
    %c0_6 = arith.constant 0 : index
    %4 = vector.load %arg4[%c0_5, %c0_6] : memref<1x96xf32, #tpu.memory_space<vmem>>, vector<1x96xf32>
    %5 = vector.broadcast %4 : vector<1x96xf32> to vector<16x96xf32>
    %6 = arith.addf %3, %5 : vector<16x96xf32>
    %c0_7 = arith.constant 0 : index
    %c0_8 = arith.constant 0 : index
    %7 = vector.load %arg5[%c0_7, %c0_8] : memref<1x96xf32, #tpu.memory_space<vmem>>, vector<1x96xf32>
    %8 = vector.shape_cast %7 : vector<1x96xf32> to vector<1x96xf32>
    %9 = vector.broadcast %8 : vector<1x96xf32> to vector<2x96xf32>
    %cst_9 = arith.constant 0.000000e+00 : f32
    %10 = vector.broadcast %cst_9 : f32 to vector<2x32xf32>
    %11 = vector.extract_strided_slice %6 {offsets = [0, 0], sizes = [2, 96], strides = [1, 1]} : vector<16x96xf32> to vector<2x96xf32>
    %cst_10 = arith.constant dense<0.000000e+00> : vector<2x96xf32>
    %12 = tpu.matmul %10, %1, %cst_10 {dimension_numbers = #tpu.dot_dimension_numbers<[1], [0], [0], [1], [0, 0, 1, 1], [], []>} : vector<2x32xf32>, vector<32x96xf32>, vector<2x96xf32> -> vector<2x96xf32>
    %13 = arith.addf %12, %9 : vector<2x96xf32>
    %14 = vector.extract_strided_slice %11 {offsets = [0, 0], sizes = [2, 32], strides = [1, 1]} : vector<2x96xf32> to vector<2x32xf32>
    %15 = vector.extract_strided_slice %13 {offsets = [0, 0], sizes = [2, 32], strides = [1, 1]} : vector<2x96xf32> to vector<2x32xf32>
    %16 = arith.addf %14, %15 : vector<2x32xf32>
    %17 = arith.negf %16 : vector<2x32xf32>
    %18 = math.exp %17 : vector<2x32xf32>
    %cst_11 = arith.constant 1.000000e+00 : f32
    %19 = vector.broadcast %cst_11 : f32 to vector<2x32xf32>
    %20 = arith.addf %19, %18 : vector<2x32xf32>
    %21 = arith.divf %19, %20 : vector<2x32xf32>
    %22 = vector.extract_strided_slice %11 {offsets = [0, 32], sizes = [2, 32], strides = [1, 1]} : vector<2x96xf32> to vector<2x32xf32>
    %23 = vector.extract_strided_slice %13 {offsets = [0, 32], sizes = [2, 32], strides = [1, 1]} : vector<2x96xf32> to vector<2x32xf32>
    %24 = arith.addf %22, %23 : vector<2x32xf32>
    %25 = arith.negf %24 : vector<2x32xf32>
    %26 = math.exp %25 : vector<2x32xf32>
    %cst_12 = arith.constant 1.000000e+00 : f32
    %27 = vector.broadcast %cst_12 : f32 to vector<2x32xf32>
    %28 = arith.addf %27, %26 : vector<2x32xf32>
    %29 = arith.divf %27, %28 : vector<2x32xf32>
    %30 = vector.extract_strided_slice %11 {offsets = [0, 64], sizes = [2, 32], strides = [1, 1]} : vector<2x96xf32> to vector<2x32xf32>
    %31 = vector.extract_strided_slice %13 {offsets = [0, 64], sizes = [2, 32], strides = [1, 1]} : vector<2x96xf32> to vector<2x32xf32>
    %32 = arith.mulf %21, %31 : vector<2x32xf32>
    %33 = arith.addf %30, %32 : vector<2x32xf32>
    %34 = math.tanh %33 : vector<2x32xf32>
    %cst_13 = arith.constant 1.000000e+00 : f32
    %35 = vector.broadcast %cst_13 : f32 to vector<2x32xf32>
    %36 = arith.subf %35, %29 : vector<2x32xf32>
    %37 = arith.mulf %36, %34 : vector<2x32xf32>
    %38 = arith.mulf %29, %10 : vector<2x32xf32>
    %39 = arith.addf %37, %38 : vector<2x32xf32>
    %c0_14 = arith.constant 0 : index
    %c0_15 = arith.constant 0 : index
    %40 = vector.load %arg13[%c0_14, %c0_15] : memref<16x32xf32, #tpu.memory_space<vmem>>, vector<2x32xf32>
    tpu.vector_store %arg13[%c0_14, %c0_15], %39 {strides = array<i32>} : memref<16x32xf32, #tpu.memory_space<vmem>>, vector<2x32xf32>,
    %41 = vector.extract_strided_slice %6 {offsets = [2, 0], sizes = [2, 96], strides = [1, 1]} : vector<16x96xf32> to vector<2x96xf32>
    %cst_16 = arith.constant dense<0.000000e+00> : vector<2x96xf32>
    %42 = tpu.matmul %39, %1, %cst_16 {dimension_numbers = #tpu.dot_dimension_numbers<[1], [0], [0], [1], [0, 0, 1, 1], [], []>} : vector<2x32xf32>, vector<32x96xf32>, vector<2x96xf32> -> vector<2x96xf32>
    %43 = arith.addf %42, %9 : vector<2x96xf32>
    %44 = vector.extract_strided_slice %41 {offsets = [0, 0], sizes = [2, 32], strides = [1, 1]} : vector<2x96xf32> to vector<2x32xf32>
    %45 = vector.extract_strided_slice %43 {offsets = [0, 0], sizes = [2, 32], strides = [1, 1]} : vector<2x96xf32> to vector<2x32xf32>
    %46 = arith.addf %44, %45 : vector<2x32xf32>
    %47 = arith.negf %46 : vector<2x32xf32>
    %48 = math.exp %47 : vector<2x32xf32>
    %cst_17 = arith.constant 1.000000e+00 : f32
    %49 = vector.broadcast %cst_17 : f32 to vector<2x32xf32>
    %50 = arith.addf %49, %48 : vector<2x32xf32>
    %51 = arith.divf %49, %50 : vector<2x32xf32>
    %52 = vector.extract_strided_slice %41 {offsets = [0, 32], sizes = [2, 32], strides = [1, 1]} : vector<2x96xf32> to vector<2x32xf32>
    %53 = vector.extract_strided_slice %43 {offsets = [0, 32], sizes = [2, 32], strides = [1, 1]} : vector<2x96xf32> to vector<2x32xf32>
    %54 = arith.addf %52, %53 : vector<2x32xf32>
    %55 = arith.negf %54 : vector<2x32xf32>
    %56 = math.exp %55 : vector<2x32xf32>
    %cst_18 = arith.constant 1.000000e+00 : f32
    %57 = vector.broadcast %cst_18 : f32 to vector<2x32xf32>
    %58 = arith.addf %57, %56 : vector<2x32xf32>
    %59 = arith.divf %57, %58 : vector<2x32xf32>
    %60 = vector.extract_strided_slice %41 {offsets = [0, 64], sizes = [2, 32], strides = [1, 1]} : vector<2x96xf32> to vector<2x32xf32>
    %61 = vector.extract_strided_slice %43 {offsets = [0, 64], sizes = [2, 32], strides = [1, 1]} : vector<2x96xf32> to vector<2x32xf32>
    %62 = arith.mulf %51, %61 : vector<2x32xf32>
    %63 = arith.addf %60, %62 : vector<2x32xf32>
    %64 = math.tanh %63 : vector<2x32xf32>
    %cst_19 = arith.constant 1.000000e+00 : f32
    %65 = vector.broadcast %cst_19 : f32 to vector<2x32xf32>
    %66 = arith.subf %65, %59 : vector<2x32xf32>
    %67 = arith.mulf %66, %64 : vector<2x32xf32>
    %68 = arith.mulf %59, %39 : vector<2x32xf32>
    %69 = arith.addf %67, %68 : vector<2x32xf32>
    %c2 = arith.constant 2 : index
    %c0_20 = arith.constant 0 : index
    %70 = vector.load %arg13[%c2, %c0_20] : memref<16x32xf32, #tpu.memory_space<vmem>>, vector<2x32xf32>
    tpu.vector_store %arg13[%c2, %c0_20], %69 {strides = array<i32>} : memref<16x32xf32, #tpu.memory_space<vmem>>, vector<2x32xf32>,
    %71 = vector.extract_strided_slice %6 {offsets = [4, 0], sizes = [2, 96], strides = [1, 1]} : vector<16x96xf32> to vector<2x96xf32>
    %cst_21 = arith.constant dense<0.000000e+00> : vector<2x96xf32>
    %72 = tpu.matmul %69, %1, %cst_21 {dimension_numbers = #tpu.dot_dimension_numbers<[1], [0], [0], [1], [0, 0, 1, 1], [], []>} : vector<2x32xf32>, vector<32x96xf32>, vector<2x96xf32> -> vector<2x96xf32>
    %73 = arith.addf %72, %9 : vector<2x96xf32>
    %74 = vector.extract_strided_slice %71 {offsets = [0, 0], sizes = [2, 32], strides = [1, 1]} : vector<2x96xf32> to vector<2x32xf32>
    %75 = vector.extract_strided_slice %73 {offsets = [0, 0], sizes = [2, 32], strides = [1, 1]} : vector<2x96xf32> to vector<2x32xf32>
    %76 = arith.addf %74, %75 : vector<2x32xf32>
    %77 = arith.negf %76 : vector<2x32xf32>
    %78 = math.exp %77 : vector<2x32xf32>
    %cst_22 = arith.constant 1.000000e+00 : f32
    %79 = vector.broadcast %cst_22 : f32 to vector<2x32xf32>
    %80 = arith.addf %79, %78 : vector<2x32xf32>
    %81 = arith.divf %79, %80 : vector<2x32xf32>
    %82 = vector.extract_strided_slice %71 {offsets = [0, 32], sizes = [2, 32], strides = [1, 1]} : vector<2x96xf32> to vector<2x32xf32>
    %83 = vector.extract_strided_slice %73 {offsets = [0, 32], sizes = [2, 32], strides = [1, 1]} : vector<2x96xf32> to vector<2x32xf32>
    %84 = arith.addf %82, %83 : vector<2x32xf32>
    %85 = arith.negf %84 : vector<2x32xf32>
    %86 = math.exp %85 : vector<2x32xf32>
    %cst_23 = arith.constant 1.000000e+00 : f32
    %87 = vector.broadcast %cst_23 : f32 to vector<2x32xf32>
    %88 = arith.addf %87, %86 : vector<2x32xf32>
    %89 = arith.divf %87, %88 : vector<2x32xf32>
    %90 = vector.extract_strided_slice %71 {offsets = [0, 64], sizes = [2, 32], strides = [1, 1]} : vector<2x96xf32> to vector<2x32xf32>
    %91 = vector.extract_strided_slice %73 {offsets = [0, 64], sizes = [2, 32], strides = [1, 1]} : vector<2x96xf32> to vector<2x32xf32>
    %92 = arith.mulf %81, %91 : vector<2x32xf32>
    %93 = arith.addf %90, %92 : vector<2x32xf32>
    %94 = math.tanh %93 : vector<2x32xf32>
    %cst_24 = arith.constant 1.000000e+00 : f32
    %95 = vector.broadcast %cst_24 : f32 to vector<2x32xf32>
    %96 = arith.subf %95, %89 : vector<2x32xf32>
    %97 = arith.mulf %96, %94 : vector<2x32xf32>
    %98 = arith.mulf %89, %69 : vector<2x32xf32>
    %99 = arith.addf %97, %98 : vector<2x32xf32>
    %c4 = arith.constant 4 : index
    %c0_25 = arith.constant 0 : index
    %100 = vector.load %arg13[%c4, %c0_25] : memref<16x32xf32, #tpu.memory_space<vmem>>, vector<2x32xf32>
    tpu.vector_store %arg13[%c4, %c0_25], %99 {strides = array<i32>} : memref<16x32xf32, #tpu.memory_space<vmem>>, vector<2x32xf32>,
    %101 = vector.extract_strided_slice %6 {offsets = [6, 0], sizes = [2, 96], strides = [1, 1]} : vector<16x96xf32> to vector<2x96xf32>
    %cst_26 = arith.constant dense<0.000000e+00> : vector<2x96xf32>
    %102 = tpu.matmul %99, %1, %cst_26 {dimension_numbers = #tpu.dot_dimension_numbers<[1], [0], [0], [1], [0, 0, 1, 1], [], []>} : vector<2x32xf32>, vector<32x96xf32>, vector<2x96xf32> -> vector<2x96xf32>
    %103 = arith.addf %102, %9 : vector<2x96xf32>
    %104 = vector.extract_strided_slice %101 {offsets = [0, 0], sizes = [2, 32], strides = [1, 1]} : vector<2x96xf32> to vector<2x32xf32>
    %105 = vector.extract_strided_slice %103 {offsets = [0, 0], sizes = [2, 32], strides = [1, 1]} : vector<2x96xf32> to vector<2x32xf32>
    %106 = arith.addf %104, %105 : vector<2x32xf32>
    %107 = arith.negf %106 : vector<2x32xf32>
    %108 = math.exp %107 : vector<2x32xf32>
    %cst_27 = arith.constant 1.000000e+00 : f32
    %109 = vector.broadcast %cst_27 : f32 to vector<2x32xf32>
    %110 = arith.addf %109, %108 : vector<2x32xf32>
    %111 = arith.divf %109, %110 : vector<2x32xf32>
    %112 = vector.extract_strided_slice %101 {offsets = [0, 32], sizes = [2, 32], strides = [1, 1]} : vector<2x96xf32> to vector<2x32xf32>
    %113 = vector.extract_strided_slice %103 {offsets = [0, 32], sizes = [2, 32], strides = [1, 1]} : vector<2x96xf32> to vector<2x32xf32>
    %114 = arith.addf %112, %113 : vector<2x32xf32>
    %115 = arith.negf %114 : vector<2x32xf32>
    %116 = math.exp %115 : vector<2x32xf32>
    %cst_28 = arith.constant 1.000000e+00 : f32
    %117 = vector.broadcast %cst_28 : f32 to vector<2x32xf32>
    %118 = arith.addf %117, %116 : vector<2x32xf32>
    %119 = arith.divf %117, %118 : vector<2x32xf32>
    %120 = vector.extract_strided_slice %101 {offsets = [0, 64], sizes = [2, 32], strides = [1, 1]} : vector<2x96xf32> to vector<2x32xf32>
    %121 = vector.extract_strided_slice %103 {offsets = [0, 64], sizes = [2, 32], strides = [1, 1]} : vector<2x96xf32> to vector<2x32xf32>
    %122 = arith.mulf %111, %121 : vector<2x32xf32>
    %123 = arith.addf %120, %122 : vector<2x32xf32>
    %124 = math.tanh %123 : vector<2x32xf32>
    %cst_29 = arith.constant 1.000000e+00 : f32
    %125 = vector.broadcast %cst_29 : f32 to vector<2x32xf32>
    %126 = arith.subf %125, %119 : vector<2x32xf32>
    %127 = arith.mulf %126, %124 : vector<2x32xf32>
    %128 = arith.mulf %119, %99 : vector<2x32xf32>
    %129 = arith.addf %127, %128 : vector<2x32xf32>
    %c6 = arith.constant 6 : index
    %c0_30 = arith.constant 0 : index
    %130 = vector.load %arg13[%c6, %c0_30] : memref<16x32xf32, #tpu.memory_space<vmem>>, vector<2x32xf32>
    tpu.vector_store %arg13[%c6, %c0_30], %129 {strides = array<i32>} : memref<16x32xf32, #tpu.memory_space<vmem>>, vector<2x32xf32>,
    %131 = vector.extract_strided_slice %6 {offsets = [8, 0], sizes = [2, 96], strides = [1, 1]} : vector<16x96xf32> to vector<2x96xf32>
    %cst_31 = arith.constant dense<0.000000e+00> : vector<2x96xf32>
    %132 = tpu.matmul %129, %1, %cst_31 {dimension_numbers = #tpu.dot_dimension_numbers<[1], [0], [0], [1], [0, 0, 1, 1], [], []>} : vector<2x32xf32>, vector<32x96xf32>, vector<2x96xf32> -> vector<2x96xf32>
    %133 = arith.addf %132, %9 : vector<2x96xf32>
    %134 = vector.extract_strided_slice %131 {offsets = [0, 0], sizes = [2, 32], strides = [1, 1]} : vector<2x96xf32> to vector<2x32xf32>
    %135 = vector.extract_strided_slice %133 {offsets = [0, 0], sizes = [2, 32], strides = [1, 1]} : vector<2x96xf32> to vector<2x32xf32>
    %136 = arith.addf %134, %135 : vector<2x32xf32>
    %137 = arith.negf %136 : vector<2x32xf32>
    %138 = math.exp %137 : vector<2x32xf32>
    %cst_32 = arith.constant 1.000000e+00 : f32
    %139 = vector.broadcast %cst_32 : f32 to vector<2x32xf32>
    %140 = arith.addf %139, %138 : vector<2x32xf32>
    %141 = arith.divf %139, %140 : vector<2x32xf32>
    %142 = vector.extract_strided_slice %131 {offsets = [0, 32], sizes = [2, 32], strides = [1, 1]} : vector<2x96xf32> to vector<2x32xf32>
    %143 = vector.extract_strided_slice %133 {offsets = [0, 32], sizes = [2, 32], strides = [1, 1]} : vector<2x96xf32> to vector<2x32xf32>
    %144 = arith.addf %142, %143 : vector<2x32xf32>
    %145 = arith.negf %144 : vector<2x32xf32>
    %146 = math.exp %145 : vector<2x32xf32>
    %cst_33 = arith.constant 1.000000e+00 : f32
    %147 = vector.broadcast %cst_33 : f32 to vector<2x32xf32>
    %148 = arith.addf %147, %146 : vector<2x32xf32>
    %149 = arith.divf %147, %148 : vector<2x32xf32>
    %150 = vector.extract_strided_slice %131 {offsets = [0, 64], sizes = [2, 32], strides = [1, 1]} : vector<2x96xf32> to vector<2x32xf32>
    %151 = vector.extract_strided_slice %133 {offsets = [0, 64], sizes = [2, 32], strides = [1, 1]} : vector<2x96xf32> to vector<2x32xf32>
    %152 = arith.mulf %141, %151 : vector<2x32xf32>
    %153 = arith.addf %150, %152 : vector<2x32xf32>
    %154 = math.tanh %153 : vector<2x32xf32>
    %cst_34 = arith.constant 1.000000e+00 : f32
    %155 = vector.broadcast %cst_34 : f32 to vector<2x32xf32>
    %156 = arith.subf %155, %149 : vector<2x32xf32>
    %157 = arith.mulf %156, %154 : vector<2x32xf32>
    %158 = arith.mulf %149, %129 : vector<2x32xf32>
    %159 = arith.addf %157, %158 : vector<2x32xf32>
    %c8 = arith.constant 8 : index
    %c0_35 = arith.constant 0 : index
    %160 = vector.load %arg13[%c8, %c0_35] : memref<16x32xf32, #tpu.memory_space<vmem>>, vector<2x32xf32>
    tpu.vector_store %arg13[%c8, %c0_35], %159 {strides = array<i32>} : memref<16x32xf32, #tpu.memory_space<vmem>>, vector<2x32xf32>,
    %161 = vector.extract_strided_slice %6 {offsets = [10, 0], sizes = [2, 96], strides = [1, 1]} : vector<16x96xf32> to vector<2x96xf32>
    %cst_36 = arith.constant dense<0.000000e+00> : vector<2x96xf32>
    %162 = tpu.matmul %159, %1, %cst_36 {dimension_numbers = #tpu.dot_dimension_numbers<[1], [0], [0], [1], [0, 0, 1, 1], [], []>} : vector<2x32xf32>, vector<32x96xf32>, vector<2x96xf32> -> vector<2x96xf32>
    %163 = arith.addf %162, %9 : vector<2x96xf32>
    %164 = vector.extract_strided_slice %161 {offsets = [0, 0], sizes = [2, 32], strides = [1, 1]} : vector<2x96xf32> to vector<2x32xf32>
    %165 = vector.extract_strided_slice %163 {offsets = [0, 0], sizes = [2, 32], strides = [1, 1]} : vector<2x96xf32> to vector<2x32xf32>
    %166 = arith.addf %164, %165 : vector<2x32xf32>
    %167 = arith.negf %166 : vector<2x32xf32>
    %168 = math.exp %167 : vector<2x32xf32>
    %cst_37 = arith.constant 1.000000e+00 : f32
    %169 = vector.broadcast %cst_37 : f32 to vector<2x32xf32>
    %170 = arith.addf %169, %168 : vector<2x32xf32>
    %171 = arith.divf %169, %170 : vector<2x32xf32>
    %172 = vector.extract_strided_slice %161 {offsets = [0, 32], sizes = [2, 32], strides = [1, 1]} : vector<2x96xf32> to vector<2x32xf32>
    %173 = vector.extract_strided_slice %163 {offsets = [0, 32], sizes = [2, 32], strides = [1, 1]} : vector<2x96xf32> to vector<2x32xf32>
    %174 = arith.addf %172, %173 : vector<2x32xf32>
    %175 = arith.negf %174 : vector<2x32xf32>
    %176 = math.exp %175 : vector<2x32xf32>
    %cst_38 = arith.constant 1.000000e+00 : f32
    %177 = vector.broadcast %cst_38 : f32 to vector<2x32xf32>
    %178 = arith.addf %177, %176 : vector<2x32xf32>
    %179 = arith.divf %177, %178 : vector<2x32xf32>
    %180 = vector.extract_strided_slice %161 {offsets = [0, 64], sizes = [2, 32], strides = [1, 1]} : vector<2x96xf32> to vector<2x32xf32>
    %181 = vector.extract_strided_slice %163 {offsets = [0, 64], sizes = [2, 32], strides = [1, 1]} : vector<2x96xf32> to vector<2x32xf32>
    %182 = arith.mulf %171, %181 : vector<2x32xf32>
    %183 = arith.addf %180, %182 : vector<2x32xf32>
    %184 = math.tanh %183 : vector<2x32xf32>
    %cst_39 = arith.constant 1.000000e+00 : f32
    %185 = vector.broadcast %cst_39 : f32 to vector<2x32xf32>
    %186 = arith.subf %185, %179 : vector<2x32xf32>
    %187 = arith.mulf %186, %184 : vector<2x32xf32>
    %188 = arith.mulf %179, %159 : vector<2x32xf32>
    %189 = arith.addf %187, %188 : vector<2x32xf32>
    %c10 = arith.constant 10 : index
    %c0_40 = arith.constant 0 : index
    %190 = vector.load %arg13[%c10, %c0_40] : memref<16x32xf32, #tpu.memory_space<vmem>>, vector<2x32xf32>
    tpu.vector_store %arg13[%c10, %c0_40], %189 {strides = array<i32>} : memref<16x32xf32, #tpu.memory_space<vmem>>, vector<2x32xf32>,
    %191 = vector.extract_strided_slice %6 {offsets = [12, 0], sizes = [2, 96], strides = [1, 1]} : vector<16x96xf32> to vector<2x96xf32>
    %cst_41 = arith.constant dense<0.000000e+00> : vector<2x96xf32>
    %192 = tpu.matmul %189, %1, %cst_41 {dimension_numbers = #tpu.dot_dimension_numbers<[1], [0], [0], [1], [0, 0, 1, 1], [], []>} : vector<2x32xf32>, vector<32x96xf32>, vector<2x96xf32> -> vector<2x96xf32>
    %193 = arith.addf %192, %9 : vector<2x96xf32>
    %194 = vector.extract_strided_slice %191 {offsets = [0, 0], sizes = [2, 32], strides = [1, 1]} : vector<2x96xf32> to vector<2x32xf32>
    %195 = vector.extract_strided_slice %193 {offsets = [0, 0], sizes = [2, 32], strides = [1, 1]} : vector<2x96xf32> to vector<2x32xf32>
    %196 = arith.addf %194, %195 : vector<2x32xf32>
    %197 = arith.negf %196 : vector<2x32xf32>
    %198 = math.exp %197 : vector<2x32xf32>
    %cst_42 = arith.constant 1.000000e+00 : f32
    %199 = vector.broadcast %cst_42 : f32 to vector<2x32xf32>
    %200 = arith.addf %199, %198 : vector<2x32xf32>
    %201 = arith.divf %199, %200 : vector<2x32xf32>
    %202 = vector.extract_strided_slice %191 {offsets = [0, 32], sizes = [2, 32], strides = [1, 1]} : vector<2x96xf32> to vector<2x32xf32>
    %203 = vector.extract_strided_slice %193 {offsets = [0, 32], sizes = [2, 32], strides = [1, 1]} : vector<2x96xf32> to vector<2x32xf32>
    %204 = arith.addf %202, %203 : vector<2x32xf32>
    %205 = arith.negf %204 : vector<2x32xf32>
    %206 = math.exp %205 : vector<2x32xf32>
    %cst_43 = arith.constant 1.000000e+00 : f32
    %207 = vector.broadcast %cst_43 : f32 to vector<2x32xf32>
    %208 = arith.addf %207, %206 : vector<2x32xf32>
    %209 = arith.divf %207, %208 : vector<2x32xf32>
    %210 = vector.extract_strided_slice %191 {offsets = [0, 64], sizes = [2, 32], strides = [1, 1]} : vector<2x96xf32> to vector<2x32xf32>
    %211 = vector.extract_strided_slice %193 {offsets = [0, 64], sizes = [2, 32], strides = [1, 1]} : vector<2x96xf32> to vector<2x32xf32>
    %212 = arith.mulf %201, %211 : vector<2x32xf32>
    %213 = arith.addf %210, %212 : vector<2x32xf32>
    %214 = math.tanh %213 : vector<2x32xf32>
    %cst_44 = arith.constant 1.000000e+00 : f32
    %215 = vector.broadcast %cst_44 : f32 to vector<2x32xf32>
    %216 = arith.subf %215, %209 : vector<2x32xf32>
    %217 = arith.mulf %216, %214 : vector<2x32xf32>
    %218 = arith.mulf %209, %189 : vector<2x32xf32>
    %219 = arith.addf %217, %218 : vector<2x32xf32>
    %c12 = arith.constant 12 : index
    %c0_45 = arith.constant 0 : index
    %220 = vector.load %arg13[%c12, %c0_45] : memref<16x32xf32, #tpu.memory_space<vmem>>, vector<2x32xf32>
    tpu.vector_store %arg13[%c12, %c0_45], %219 {strides = array<i32>} : memref<16x32xf32, #tpu.memory_space<vmem>>, vector<2x32xf32>,
    %221 = vector.extract_strided_slice %6 {offsets = [14, 0], sizes = [2, 96], strides = [1, 1]} : vector<16x96xf32> to vector<2x96xf32>
    %cst_46 = arith.constant dense<0.000000e+00> : vector<2x96xf32>
    %222 = tpu.matmul %219, %1, %cst_46 {dimension_numbers = #tpu.dot_dimension_numbers<[1], [0], [0], [1], [0, 0, 1, 1], [], []>} : vector<2x32xf32>, vector<32x96xf32>, vector<2x96xf32> -> vector<2x96xf32>
    %223 = arith.addf %222, %9 : vector<2x96xf32>
    %224 = vector.extract_strided_slice %221 {offsets = [0, 0], sizes = [2, 32], strides = [1, 1]} : vector<2x96xf32> to vector<2x32xf32>
    %225 = vector.extract_strided_slice %223 {offsets = [0, 0], sizes = [2, 32], strides = [1, 1]} : vector<2x96xf32> to vector<2x32xf32>
    %226 = arith.addf %224, %225 : vector<2x32xf32>
    %227 = arith.negf %226 : vector<2x32xf32>
    %228 = math.exp %227 : vector<2x32xf32>
    %cst_47 = arith.constant 1.000000e+00 : f32
    %229 = vector.broadcast %cst_47 : f32 to vector<2x32xf32>
    %230 = arith.addf %229, %228 : vector<2x32xf32>
    %231 = arith.divf %229, %230 : vector<2x32xf32>
    %232 = vector.extract_strided_slice %221 {offsets = [0, 32], sizes = [2, 32], strides = [1, 1]} : vector<2x96xf32> to vector<2x32xf32>
    %233 = vector.extract_strided_slice %223 {offsets = [0, 32], sizes = [2, 32], strides = [1, 1]} : vector<2x96xf32> to vector<2x32xf32>
    %234 = arith.addf %232, %233 : vector<2x32xf32>
    %235 = arith.negf %234 : vector<2x32xf32>
    %236 = math.exp %235 : vector<2x32xf32>
    %cst_48 = arith.constant 1.000000e+00 : f32
    %237 = vector.broadcast %cst_48 : f32 to vector<2x32xf32>
    %238 = arith.addf %237, %236 : vector<2x32xf32>
    %239 = arith.divf %237, %238 : vector<2x32xf32>
    %240 = vector.extract_strided_slice %221 {offsets = [0, 64], sizes = [2, 32], strides = [1, 1]} : vector<2x96xf32> to vector<2x32xf32>
    %241 = vector.extract_strided_slice %223 {offsets = [0, 64], sizes = [2, 32], strides = [1, 1]} : vector<2x96xf32> to vector<2x32xf32>
    %242 = arith.mulf %231, %241 : vector<2x32xf32>
    %243 = arith.addf %240, %242 : vector<2x32xf32>
    %244 = math.tanh %243 : vector<2x32xf32>
    %cst_49 = arith.constant 1.000000e+00 : f32
    %245 = vector.broadcast %cst_49 : f32 to vector<2x32xf32>
    %246 = arith.subf %245, %239 : vector<2x32xf32>
    %247 = arith.mulf %246, %244 : vector<2x32xf32>
    %248 = arith.mulf %239, %219 : vector<2x32xf32>
    %249 = arith.addf %247, %248 : vector<2x32xf32>
    %c14 = arith.constant 14 : index
    %c0_50 = arith.constant 0 : index
    %250 = vector.load %arg13[%c14, %c0_50] : memref<16x32xf32, #tpu.memory_space<vmem>>, vector<2x32xf32>
    tpu.vector_store %arg13[%c14, %c0_50], %249 {strides = array<i32>} : memref<16x32xf32, #tpu.memory_space<vmem>>, vector<2x32xf32>,
    %c0_51 = arith.constant 0 : index
    %c0_52 = arith.constant 0 : index
    %251 = vector.load %arg14[%c0_51, %c0_52] : memref<4x32xf32, #tpu.memory_space<vmem>>, vector<2x32xf32>
    tpu.vector_store %arg14[%c0_51, %c0_52], %249 {strides = array<i32>} : memref<4x32xf32, #tpu.memory_space<vmem>>, vector<2x32xf32>,
    %c0_53 = arith.constant 0 : index
    %c0_54 = arith.constant 0 : index
    %252 = vector.load %arg13[%c0_53, %c0_54] : memref<16x32xf32, #tpu.memory_space<vmem>>, vector<16x32xf32>
    %c0_55 = arith.constant 0 : index
    %c0_56 = arith.constant 0 : index
    %253 = vector.load %arg7[%c0_55, %c0_56] : memref<32x96xf32, #tpu.memory_space<vmem>>, vector<32x96xf32>
    %c0_57 = arith.constant 0 : index
    %c0_58 = arith.constant 0 : index
    %254 = vector.load %arg6[%c0_57, %c0_58] : memref<32x96xf32, #tpu.memory_space<vmem>>, vector<32x96xf32>
    %cst_59 = arith.constant dense<0.000000e+00> : vector<16x96xf32>
    %255 = tpu.matmul %252, %254, %cst_59 {dimension_numbers = #tpu.dot_dimension_numbers<[1], [0], [0], [1], [0, 0, 1, 1], [], []>} : vector<16x32xf32>, vector<32x96xf32>, vector<16x96xf32> -> vector<16x96xf32>
    %c0_60 = arith.constant 0 : index
    %c0_61 = arith.constant 0 : index
    %256 = vector.load %arg8[%c0_60, %c0_61] : memref<1x96xf32, #tpu.memory_space<vmem>>, vector<1x96xf32>
    %257 = vector.broadcast %256 : vector<1x96xf32> to vector<16x96xf32>
    %258 = arith.addf %255, %257 : vector<16x96xf32>
    %c0_62 = arith.constant 0 : index
    %c0_63 = arith.constant 0 : index
    %259 = vector.load %arg9[%c0_62, %c0_63] : memref<1x96xf32, #tpu.memory_space<vmem>>, vector<1x96xf32>
    %260 = vector.shape_cast %259 : vector<1x96xf32> to vector<1x96xf32>
    %261 = vector.broadcast %260 : vector<1x96xf32> to vector<2x96xf32>
    %cst_64 = arith.constant 0.000000e+00 : f32
    %262 = vector.broadcast %cst_64 : f32 to vector<2x32xf32>
    %263 = vector.extract_strided_slice %258 {offsets = [0, 0], sizes = [2, 96], strides = [1, 1]} : vector<16x96xf32> to vector<2x96xf32>
    %cst_65 = arith.constant dense<0.000000e+00> : vector<2x96xf32>
    %264 = tpu.matmul %262, %253, %cst_65 {dimension_numbers = #tpu.dot_dimension_numbers<[1], [0], [0], [1], [0, 0, 1, 1], [], []>} : vector<2x32xf32>, vector<32x96xf32>, vector<2x96xf32> -> vector<2x96xf32>
    %265 = arith.addf %264, %261 : vector<2x96xf32>
    %266 = vector.extract_strided_slice %263 {offsets = [0, 0], sizes = [2, 32], strides = [1, 1]} : vector<2x96xf32> to vector<2x32xf32>
    %267 = vector.extract_strided_slice %265 {offsets = [0, 0], sizes = [2, 32], strides = [1, 1]} : vector<2x96xf32> to vector<2x32xf32>
    %268 = arith.addf %266, %267 : vector<2x32xf32>
    %269 = arith.negf %268 : vector<2x32xf32>
    %270 = math.exp %269 : vector<2x32xf32>
    %cst_66 = arith.constant 1.000000e+00 : f32
    %271 = vector.broadcast %cst_66 : f32 to vector<2x32xf32>
    %272 = arith.addf %271, %270 : vector<2x32xf32>
    %273 = arith.divf %271, %272 : vector<2x32xf32>
    %274 = vector.extract_strided_slice %263 {offsets = [0, 32], sizes = [2, 32], strides = [1, 1]} : vector<2x96xf32> to vector<2x32xf32>
    %275 = vector.extract_strided_slice %265 {offsets = [0, 32], sizes = [2, 32], strides = [1, 1]} : vector<2x96xf32> to vector<2x32xf32>
    %276 = arith.addf %274, %275 : vector<2x32xf32>
    %277 = arith.negf %276 : vector<2x32xf32>
    %278 = math.exp %277 : vector<2x32xf32>
    %cst_67 = arith.constant 1.000000e+00 : f32
    %279 = vector.broadcast %cst_67 : f32 to vector<2x32xf32>
    %280 = arith.addf %279, %278 : vector<2x32xf32>
    %281 = arith.divf %279, %280 : vector<2x32xf32>
    %282 = vector.extract_strided_slice %263 {offsets = [0, 64], sizes = [2, 32], strides = [1, 1]} : vector<2x96xf32> to vector<2x32xf32>
    %283 = vector.extract_strided_slice %265 {offsets = [0, 64], sizes = [2, 32], strides = [1, 1]} : vector<2x96xf32> to vector<2x32xf32>
    %284 = arith.mulf %273, %283 : vector<2x32xf32>
    %285 = arith.addf %282, %284 : vector<2x32xf32>
    %286 = math.tanh %285 : vector<2x32xf32>
    %cst_68 = arith.constant 1.000000e+00 : f32
    %287 = vector.broadcast %cst_68 : f32 to vector<2x32xf32>
    %288 = arith.subf %287, %281 : vector<2x32xf32>
    %289 = arith.mulf %288, %286 : vector<2x32xf32>
    %290 = arith.mulf %281, %262 : vector<2x32xf32>
    %291 = arith.addf %289, %290 : vector<2x32xf32>
    %292 = vector.extract_strided_slice %258 {offsets = [2, 0], sizes = [2, 96], strides = [1, 1]} : vector<16x96xf32> to vector<2x96xf32>
    %cst_69 = arith.constant dense<0.000000e+00> : vector<2x96xf32>
    %293 = tpu.matmul %291, %253, %cst_69 {dimension_numbers = #tpu.dot_dimension_numbers<[1], [0], [0], [1], [0, 0, 1, 1], [], []>} : vector<2x32xf32>, vector<32x96xf32>, vector<2x96xf32> -> vector<2x96xf32>
    %294 = arith.addf %293, %261 : vector<2x96xf32>
    %295 = vector.extract_strided_slice %292 {offsets = [0, 0], sizes = [2, 32], strides = [1, 1]} : vector<2x96xf32> to vector<2x32xf32>
    %296 = vector.extract_strided_slice %294 {offsets = [0, 0], sizes = [2, 32], strides = [1, 1]} : vector<2x96xf32> to vector<2x32xf32>
    %297 = arith.addf %295, %296 : vector<2x32xf32>
    %298 = arith.negf %297 : vector<2x32xf32>
    %299 = math.exp %298 : vector<2x32xf32>
    %cst_70 = arith.constant 1.000000e+00 : f32
    %300 = vector.broadcast %cst_70 : f32 to vector<2x32xf32>
    %301 = arith.addf %300, %299 : vector<2x32xf32>
    %302 = arith.divf %300, %301 : vector<2x32xf32>
    %303 = vector.extract_strided_slice %292 {offsets = [0, 32], sizes = [2, 32], strides = [1, 1]} : vector<2x96xf32> to vector<2x32xf32>
    %304 = vector.extract_strided_slice %294 {offsets = [0, 32], sizes = [2, 32], strides = [1, 1]} : vector<2x96xf32> to vector<2x32xf32>
    %305 = arith.addf %303, %304 : vector<2x32xf32>
    %306 = arith.negf %305 : vector<2x32xf32>
    %307 = math.exp %306 : vector<2x32xf32>
    %cst_71 = arith.constant 1.000000e+00 : f32
    %308 = vector.broadcast %cst_71 : f32 to vector<2x32xf32>
    %309 = arith.addf %308, %307 : vector<2x32xf32>
    %310 = arith.divf %308, %309 : vector<2x32xf32>
    %311 = vector.extract_strided_slice %292 {offsets = [0, 64], sizes = [2, 32], strides = [1, 1]} : vector<2x96xf32> to vector<2x32xf32>
    %312 = vector.extract_strided_slice %294 {offsets = [0, 64], sizes = [2, 32], strides = [1, 1]} : vector<2x96xf32> to vector<2x32xf32>
    %313 = arith.mulf %302, %312 : vector<2x32xf32>
    %314 = arith.addf %311, %313 : vector<2x32xf32>
    %315 = math.tanh %314 : vector<2x32xf32>
    %cst_72 = arith.constant 1.000000e+00 : f32
    %316 = vector.broadcast %cst_72 : f32 to vector<2x32xf32>
    %317 = arith.subf %316, %310 : vector<2x32xf32>
    %318 = arith.mulf %317, %315 : vector<2x32xf32>
    %319 = arith.mulf %310, %291 : vector<2x32xf32>
    %320 = arith.addf %318, %319 : vector<2x32xf32>
    %321 = vector.extract_strided_slice %258 {offsets = [4, 0], sizes = [2, 96], strides = [1, 1]} : vector<16x96xf32> to vector<2x96xf32>
    %cst_73 = arith.constant dense<0.000000e+00> : vector<2x96xf32>
    %322 = tpu.matmul %320, %253, %cst_73 {dimension_numbers = #tpu.dot_dimension_numbers<[1], [0], [0], [1], [0, 0, 1, 1], [], []>} : vector<2x32xf32>, vector<32x96xf32>, vector<2x96xf32> -> vector<2x96xf32>
    %323 = arith.addf %322, %261 : vector<2x96xf32>
    %324 = vector.extract_strided_slice %321 {offsets = [0, 0], sizes = [2, 32], strides = [1, 1]} : vector<2x96xf32> to vector<2x32xf32>
    %325 = vector.extract_strided_slice %323 {offsets = [0, 0], sizes = [2, 32], strides = [1, 1]} : vector<2x96xf32> to vector<2x32xf32>
    %326 = arith.addf %324, %325 : vector<2x32xf32>
    %327 = arith.negf %326 : vector<2x32xf32>
    %328 = math.exp %327 : vector<2x32xf32>
    %cst_74 = arith.constant 1.000000e+00 : f32
    %329 = vector.broadcast %cst_74 : f32 to vector<2x32xf32>
    %330 = arith.addf %329, %328 : vector<2x32xf32>
    %331 = arith.divf %329, %330 : vector<2x32xf32>
    %332 = vector.extract_strided_slice %321 {offsets = [0, 32], sizes = [2, 32], strides = [1, 1]} : vector<2x96xf32> to vector<2x32xf32>
    %333 = vector.extract_strided_slice %323 {offsets = [0, 32], sizes = [2, 32], strides = [1, 1]} : vector<2x96xf32> to vector<2x32xf32>
    %334 = arith.addf %332, %333 : vector<2x32xf32>
    %335 = arith.negf %334 : vector<2x32xf32>
    %336 = math.exp %335 : vector<2x32xf32>
    %cst_75 = arith.constant 1.000000e+00 : f32
    %337 = vector.broadcast %cst_75 : f32 to vector<2x32xf32>
    %338 = arith.addf %337, %336 : vector<2x32xf32>
    %339 = arith.divf %337, %338 : vector<2x32xf32>
    %340 = vector.extract_strided_slice %321 {offsets = [0, 64], sizes = [2, 32], strides = [1, 1]} : vector<2x96xf32> to vector<2x32xf32>
    %341 = vector.extract_strided_slice %323 {offsets = [0, 64], sizes = [2, 32], strides = [1, 1]} : vector<2x96xf32> to vector<2x32xf32>
    %342 = arith.mulf %331, %341 : vector<2x32xf32>
    %343 = arith.addf %340, %342 : vector<2x32xf32>
    %344 = math.tanh %343 : vector<2x32xf32>
    %cst_76 = arith.constant 1.000000e+00 : f32
    %345 = vector.broadcast %cst_76 : f32 to vector<2x32xf32>
    %346 = arith.subf %345, %339 : vector<2x32xf32>
    %347 = arith.mulf %346, %344 : vector<2x32xf32>
    %348 = arith.mulf %339, %320 : vector<2x32xf32>
    %349 = arith.addf %347, %348 : vector<2x32xf32>
    %350 = vector.extract_strided_slice %258 {offsets = [6, 0], sizes = [2, 96], strides = [1, 1]} : vector<16x96xf32> to vector<2x96xf32>
    %cst_77 = arith.constant dense<0.000000e+00> : vector<2x96xf32>
    %351 = tpu.matmul %349, %253, %cst_77 {dimension_numbers = #tpu.dot_dimension_numbers<[1], [0], [0], [1], [0, 0, 1, 1], [], []>} : vector<2x32xf32>, vector<32x96xf32>, vector<2x96xf32> -> vector<2x96xf32>
    %352 = arith.addf %351, %261 : vector<2x96xf32>
    %353 = vector.extract_strided_slice %350 {offsets = [0, 0], sizes = [2, 32], strides = [1, 1]} : vector<2x96xf32> to vector<2x32xf32>
    %354 = vector.extract_strided_slice %352 {offsets = [0, 0], sizes = [2, 32], strides = [1, 1]} : vector<2x96xf32> to vector<2x32xf32>
    %355 = arith.addf %353, %354 : vector<2x32xf32>
    %356 = arith.negf %355 : vector<2x32xf32>
    %357 = math.exp %356 : vector<2x32xf32>
    %cst_78 = arith.constant 1.000000e+00 : f32
    %358 = vector.broadcast %cst_78 : f32 to vector<2x32xf32>
    %359 = arith.addf %358, %357 : vector<2x32xf32>
    %360 = arith.divf %358, %359 : vector<2x32xf32>
    %361 = vector.extract_strided_slice %350 {offsets = [0, 32], sizes = [2, 32], strides = [1, 1]} : vector<2x96xf32> to vector<2x32xf32>
    %362 = vector.extract_strided_slice %352 {offsets = [0, 32], sizes = [2, 32], strides = [1, 1]} : vector<2x96xf32> to vector<2x32xf32>
    %363 = arith.addf %361, %362 : vector<2x32xf32>
    %364 = arith.negf %363 : vector<2x32xf32>
    %365 = math.exp %364 : vector<2x32xf32>
    %cst_79 = arith.constant 1.000000e+00 : f32
    %366 = vector.broadcast %cst_79 : f32 to vector<2x32xf32>
    %367 = arith.addf %366, %365 : vector<2x32xf32>
    %368 = arith.divf %366, %367 : vector<2x32xf32>
    %369 = vector.extract_strided_slice %350 {offsets = [0, 64], sizes = [2, 32], strides = [1, 1]} : vector<2x96xf32> to vector<2x32xf32>
    %370 = vector.extract_strided_slice %352 {offsets = [0, 64], sizes = [2, 32], strides = [1, 1]} : vector<2x96xf32> to vector<2x32xf32>
    %371 = arith.mulf %360, %370 : vector<2x32xf32>
    %372 = arith.addf %369, %371 : vector<2x32xf32>
    %373 = math.tanh %372 : vector<2x32xf32>
    %cst_80 = arith.constant 1.000000e+00 : f32
    %374 = vector.broadcast %cst_80 : f32 to vector<2x32xf32>
    %375 = arith.subf %374, %368 : vector<2x32xf32>
    %376 = arith.mulf %375, %373 : vector<2x32xf32>
    %377 = arith.mulf %368, %349 : vector<2x32xf32>
    %378 = arith.addf %376, %377 : vector<2x32xf32>
    %379 = vector.extract_strided_slice %258 {offsets = [8, 0], sizes = [2, 96], strides = [1, 1]} : vector<16x96xf32> to vector<2x96xf32>
    %cst_81 = arith.constant dense<0.000000e+00> : vector<2x96xf32>
    %380 = tpu.matmul %378, %253, %cst_81 {dimension_numbers = #tpu.dot_dimension_numbers<[1], [0], [0], [1], [0, 0, 1, 1], [], []>} : vector<2x32xf32>, vector<32x96xf32>, vector<2x96xf32> -> vector<2x96xf32>
    %381 = arith.addf %380, %261 : vector<2x96xf32>
    %382 = vector.extract_strided_slice %379 {offsets = [0, 0], sizes = [2, 32], strides = [1, 1]} : vector<2x96xf32> to vector<2x32xf32>
    %383 = vector.extract_strided_slice %381 {offsets = [0, 0], sizes = [2, 32], strides = [1, 1]} : vector<2x96xf32> to vector<2x32xf32>
    %384 = arith.addf %382, %383 : vector<2x32xf32>
    %385 = arith.negf %384 : vector<2x32xf32>
    %386 = math.exp %385 : vector<2x32xf32>
    %cst_82 = arith.constant 1.000000e+00 : f32
    %387 = vector.broadcast %cst_82 : f32 to vector<2x32xf32>
    %388 = arith.addf %387, %386 : vector<2x32xf32>
    %389 = arith.divf %387, %388 : vector<2x32xf32>
    %390 = vector.extract_strided_slice %379 {offsets = [0, 32], sizes = [2, 32], strides = [1, 1]} : vector<2x96xf32> to vector<2x32xf32>
    %391 = vector.extract_strided_slice %381 {offsets = [0, 32], sizes = [2, 32], strides = [1, 1]} : vector<2x96xf32> to vector<2x32xf32>
    %392 = arith.addf %390, %391 : vector<2x32xf32>
    %393 = arith.negf %392 : vector<2x32xf32>
    %394 = math.exp %393 : vector<2x32xf32>
    %cst_83 = arith.constant 1.000000e+00 : f32
    %395 = vector.broadcast %cst_83 : f32 to vector<2x32xf32>
    %396 = arith.addf %395, %394 : vector<2x32xf32>
    %397 = arith.divf %395, %396 : vector<2x32xf32>
    %398 = vector.extract_strided_slice %379 {offsets = [0, 64], sizes = [2, 32], strides = [1, 1]} : vector<2x96xf32> to vector<2x32xf32>
    %399 = vector.extract_strided_slice %381 {offsets = [0, 64], sizes = [2, 32], strides = [1, 1]} : vector<2x96xf32> to vector<2x32xf32>
    %400 = arith.mulf %389, %399 : vector<2x32xf32>
    %401 = arith.addf %398, %400 : vector<2x32xf32>
    %402 = math.tanh %401 : vector<2x32xf32>
    %cst_84 = arith.constant 1.000000e+00 : f32
    %403 = vector.broadcast %cst_84 : f32 to vector<2x32xf32>
    %404 = arith.subf %403, %397 : vector<2x32xf32>
    %405 = arith.mulf %404, %402 : vector<2x32xf32>
    %406 = arith.mulf %397, %378 : vector<2x32xf32>
    %407 = arith.addf %405, %406 : vector<2x32xf32>
    %408 = vector.extract_strided_slice %258 {offsets = [10, 0], sizes = [2, 96], strides = [1, 1]} : vector<16x96xf32> to vector<2x96xf32>
    %cst_85 = arith.constant dense<0.000000e+00> : vector<2x96xf32>
    %409 = tpu.matmul %407, %253, %cst_85 {dimension_numbers = #tpu.dot_dimension_numbers<[1], [0], [0], [1], [0, 0, 1, 1], [], []>} : vector<2x32xf32>, vector<32x96xf32>, vector<2x96xf32> -> vector<2x96xf32>
    %410 = arith.addf %409, %261 : vector<2x96xf32>
    %411 = vector.extract_strided_slice %408 {offsets = [0, 0], sizes = [2, 32], strides = [1, 1]} : vector<2x96xf32> to vector<2x32xf32>
    %412 = vector.extract_strided_slice %410 {offsets = [0, 0], sizes = [2, 32], strides = [1, 1]} : vector<2x96xf32> to vector<2x32xf32>
    %413 = arith.addf %411, %412 : vector<2x32xf32>
    %414 = arith.negf %413 : vector<2x32xf32>
    %415 = math.exp %414 : vector<2x32xf32>
    %cst_86 = arith.constant 1.000000e+00 : f32
    %416 = vector.broadcast %cst_86 : f32 to vector<2x32xf32>
    %417 = arith.addf %416, %415 : vector<2x32xf32>
    %418 = arith.divf %416, %417 : vector<2x32xf32>
    %419 = vector.extract_strided_slice %408 {offsets = [0, 32], sizes = [2, 32], strides = [1, 1]} : vector<2x96xf32> to vector<2x32xf32>
    %420 = vector.extract_strided_slice %410 {offsets = [0, 32], sizes = [2, 32], strides = [1, 1]} : vector<2x96xf32> to vector<2x32xf32>
    %421 = arith.addf %419, %420 : vector<2x32xf32>
    %422 = arith.negf %421 : vector<2x32xf32>
    %423 = math.exp %422 : vector<2x32xf32>
    %cst_87 = arith.constant 1.000000e+00 : f32
    %424 = vector.broadcast %cst_87 : f32 to vector<2x32xf32>
    %425 = arith.addf %424, %423 : vector<2x32xf32>
    %426 = arith.divf %424, %425 : vector<2x32xf32>
    %427 = vector.extract_strided_slice %408 {offsets = [0, 64], sizes = [2, 32], strides = [1, 1]} : vector<2x96xf32> to vector<2x32xf32>
    %428 = vector.extract_strided_slice %410 {offsets = [0, 64], sizes = [2, 32], strides = [1, 1]} : vector<2x96xf32> to vector<2x32xf32>
    %429 = arith.mulf %418, %428 : vector<2x32xf32>
    %430 = arith.addf %427, %429 : vector<2x32xf32>
    %431 = math.tanh %430 : vector<2x32xf32>
    %cst_88 = arith.constant 1.000000e+00 : f32
    %432 = vector.broadcast %cst_88 : f32 to vector<2x32xf32>
    %433 = arith.subf %432, %426 : vector<2x32xf32>
    %434 = arith.mulf %433, %431 : vector<2x32xf32>
    %435 = arith.mulf %426, %407 : vector<2x32xf32>
    %436 = arith.addf %434, %435 : vector<2x32xf32>
    %437 = vector.extract_strided_slice %258 {offsets = [12, 0], sizes = [2, 96], strides = [1, 1]} : vector<16x96xf32> to vector<2x96xf32>
    %cst_89 = arith.constant dense<0.000000e+00> : vector<2x96xf32>
    %438 = tpu.matmul %436, %253, %cst_89 {dimension_numbers = #tpu.dot_dimension_numbers<[1], [0], [0], [1], [0, 0, 1, 1], [], []>} : vector<2x32xf32>, vector<32x96xf32>, vector<2x96xf32> -> vector<2x96xf32>
    %439 = arith.addf %438, %261 : vector<2x96xf32>
    %440 = vector.extract_strided_slice %437 {offsets = [0, 0], sizes = [2, 32], strides = [1, 1]} : vector<2x96xf32> to vector<2x32xf32>
    %441 = vector.extract_strided_slice %439 {offsets = [0, 0], sizes = [2, 32], strides = [1, 1]} : vector<2x96xf32> to vector<2x32xf32>
    %442 = arith.addf %440, %441 : vector<2x32xf32>
    %443 = arith.negf %442 : vector<2x32xf32>
    %444 = math.exp %443 : vector<2x32xf32>
    %cst_90 = arith.constant 1.000000e+00 : f32
    %445 = vector.broadcast %cst_90 : f32 to vector<2x32xf32>
    %446 = arith.addf %445, %444 : vector<2x32xf32>
    %447 = arith.divf %445, %446 : vector<2x32xf32>
    %448 = vector.extract_strided_slice %437 {offsets = [0, 32], sizes = [2, 32], strides = [1, 1]} : vector<2x96xf32> to vector<2x32xf32>
    %449 = vector.extract_strided_slice %439 {offsets = [0, 32], sizes = [2, 32], strides = [1, 1]} : vector<2x96xf32> to vector<2x32xf32>
    %450 = arith.addf %448, %449 : vector<2x32xf32>
    %451 = arith.negf %450 : vector<2x32xf32>
    %452 = math.exp %451 : vector<2x32xf32>
    %cst_91 = arith.constant 1.000000e+00 : f32
    %453 = vector.broadcast %cst_91 : f32 to vector<2x32xf32>
    %454 = arith.addf %453, %452 : vector<2x32xf32>
    %455 = arith.divf %453, %454 : vector<2x32xf32>
    %456 = vector.extract_strided_slice %437 {offsets = [0, 64], sizes = [2, 32], strides = [1, 1]} : vector<2x96xf32> to vector<2x32xf32>
    %457 = vector.extract_strided_slice %439 {offsets = [0, 64], sizes = [2, 32], strides = [1, 1]} : vector<2x96xf32> to vector<2x32xf32>
    %458 = arith.mulf %447, %457 : vector<2x32xf32>
    %459 = arith.addf %456, %458 : vector<2x32xf32>
    %460 = math.tanh %459 : vector<2x32xf32>
    %cst_92 = arith.constant 1.000000e+00 : f32
    %461 = vector.broadcast %cst_92 : f32 to vector<2x32xf32>
    %462 = arith.subf %461, %455 : vector<2x32xf32>
    %463 = arith.mulf %462, %460 : vector<2x32xf32>
    %464 = arith.mulf %455, %436 : vector<2x32xf32>
    %465 = arith.addf %463, %464 : vector<2x32xf32>
    %466 = vector.extract_strided_slice %258 {offsets = [14, 0], sizes = [2, 96], strides = [1, 1]} : vector<16x96xf32> to vector<2x96xf32>
    %cst_93 = arith.constant dense<0.000000e+00> : vector<2x96xf32>
    %467 = tpu.matmul %465, %253, %cst_93 {dimension_numbers = #tpu.dot_dimension_numbers<[1], [0], [0], [1], [0, 0, 1, 1], [], []>} : vector<2x32xf32>, vector<32x96xf32>, vector<2x96xf32> -> vector<2x96xf32>
    %468 = arith.addf %467, %261 : vector<2x96xf32>
    %469 = vector.extract_strided_slice %466 {offsets = [0, 0], sizes = [2, 32], strides = [1, 1]} : vector<2x96xf32> to vector<2x32xf32>
    %470 = vector.extract_strided_slice %468 {offsets = [0, 0], sizes = [2, 32], strides = [1, 1]} : vector<2x96xf32> to vector<2x32xf32>
    %471 = arith.addf %469, %470 : vector<2x32xf32>
    %472 = arith.negf %471 : vector<2x32xf32>
    %473 = math.exp %472 : vector<2x32xf32>
    %cst_94 = arith.constant 1.000000e+00 : f32
    %474 = vector.broadcast %cst_94 : f32 to vector<2x32xf32>
    %475 = arith.addf %474, %473 : vector<2x32xf32>
    %476 = arith.divf %474, %475 : vector<2x32xf32>
    %477 = vector.extract_strided_slice %466 {offsets = [0, 32], sizes = [2, 32], strides = [1, 1]} : vector<2x96xf32> to vector<2x32xf32>
    %478 = vector.extract_strided_slice %468 {offsets = [0, 32], sizes = [2, 32], strides = [1, 1]} : vector<2x96xf32> to vector<2x32xf32>
    %479 = arith.addf %477, %478 : vector<2x32xf32>
    %480 = arith.negf %479 : vector<2x32xf32>
    %481 = math.exp %480 : vector<2x32xf32>
    %cst_95 = arith.constant 1.000000e+00 : f32
    %482 = vector.broadcast %cst_95 : f32 to vector<2x32xf32>
    %483 = arith.addf %482, %481 : vector<2x32xf32>
    %484 = arith.divf %482, %483 : vector<2x32xf32>
    %485 = vector.extract_strided_slice %466 {offsets = [0, 64], sizes = [2, 32], strides = [1, 1]} : vector<2x96xf32> to vector<2x32xf32>
    %486 = vector.extract_strided_slice %468 {offsets = [0, 64], sizes = [2, 32], strides = [1, 1]} : vector<2x96xf32> to vector<2x32xf32>
    %487 = arith.mulf %476, %486 : vector<2x32xf32>
    %488 = arith.addf %485, %487 : vector<2x32xf32>
    %489 = math.tanh %488 : vector<2x32xf32>
    %cst_96 = arith.constant 1.000000e+00 : f32
    %490 = vector.broadcast %cst_96 : f32 to vector<2x32xf32>
    %491 = arith.subf %490, %484 : vector<2x32xf32>
    %492 = arith.mulf %491, %489 : vector<2x32xf32>
    %493 = arith.mulf %484, %465 : vector<2x32xf32>
    %494 = arith.addf %492, %493 : vector<2x32xf32>
    %c2_97 = arith.constant 2 : index
    %c0_98 = arith.constant 0 : index
    %495 = vector.load %arg14[%c2_97, %c0_98] : memref<4x32xf32, #tpu.memory_space<vmem>>, vector<2x32xf32>
    tpu.vector_store %arg14[%c2_97, %c0_98], %494 {strides = array<i32>} : memref<4x32xf32, #tpu.memory_space<vmem>>, vector<2x32xf32>,
    %c0_99 = arith.constant 0 : index
    %c0_100 = arith.constant 0 : index
    %496 = vector.load %arg14[%c0_99, %c0_100] : memref<4x32xf32, #tpu.memory_space<vmem>>, vector<4x32xf32>
    %c0_101 = arith.constant 0 : index
    %c0_102 = arith.constant 0 : index
    %497 = vector.load %arg10[%c0_101, %c0_102] : memref<32x5xf32, #tpu.memory_space<vmem>>, vector<32x5xf32>
    %cst_103 = arith.constant dense<0.000000e+00> : vector<4x5xf32>
    %498 = tpu.matmul %496, %497, %cst_103 {dimension_numbers = #tpu.dot_dimension_numbers<[1], [0], [0], [1], [0, 0, 1, 1], [], []>} : vector<4x32xf32>, vector<32x5xf32>, vector<4x5xf32> -> vector<4x5xf32>
    %c0_104 = arith.constant 0 : index
    %c0_105 = arith.constant 0 : index
    %499 = vector.load %arg11[%c0_104, %c0_105] : memref<1x5xf32, #tpu.memory_space<vmem>>, vector<1x5xf32>
    %500 = vector.broadcast %499 : vector<1x5xf32> to vector<4x5xf32>
    %501 = arith.addf %498, %500 : vector<4x5xf32>
    %c0_106 = arith.constant 0 : index
    %c0_107 = arith.constant 0 : index
    %502 = vector.load %arg12[%c0_106, %c0_107] : memref<4x5xf32, #tpu.memory_space<vmem>>, vector<4x5xf32>
    tpu.vector_store %arg12[%c0_106, %c0_107], %501 {strides = array<i32>} : memref<4x5xf32, #tpu.memory_space<vmem>>, vector<4x5xf32>,
    return
  }
  func.func @transform_0(%arg0: i32) -> (i32, i32) {
    %c0_i32 = arith.constant 0 : i32
    %c0_i32_0 = arith.constant 0 : i32
    %c0_i32_1 = arith.constant 0 : i32
    return %c0_i32, %c0_i32_0 : i32, i32
  }
  func.func @transform_1(%arg0: i32) -> (i32, i32) {
    %c0_i32 = arith.constant 0 : i32
    %c0_i32_0 = arith.constant 0 : i32
    %c0_i32_1 = arith.constant 0 : i32
    return %c0_i32, %c0_i32_0 : i32, i32
  }
  func.func @transform_2(%arg0: i32) -> (i32, i32) {
    %c0_i32 = arith.constant 0 : i32
    %c0_i32_0 = arith.constant 0 : i32
    %c0_i32_1 = arith.constant 0 : i32
    return %c0_i32, %c0_i32_0 : i32, i32
  }
  func.func @transform_3(%arg0: i32) -> (i32, i32) {
    %c0_i32 = arith.constant 0 : i32
    %c0_i32_0 = arith.constant 0 : i32
    %c0_i32_1 = arith.constant 0 : i32
    return %c0_i32, %c0_i32_0 : i32, i32
  }
  func.func @transform_4(%arg0: i32) -> (i32, i32) {
    %c0_i32 = arith.constant 0 : i32
    %c0_i32_0 = arith.constant 0 : i32
    %c0_i32_1 = arith.constant 0 : i32
    return %c0_i32, %c0_i32_0 : i32, i32
  }
  func.func @transform_5(%arg0: i32) -> (i32, i32) {
    %c0_i32 = arith.constant 0 : i32
    %c0_i32_0 = arith.constant 0 : i32
    %c0_i32_1 = arith.constant 0 : i32
    return %c0_i32, %c0_i32_0 : i32, i32
  }
  func.func @transform_6(%arg0: i32) -> (i32, i32) {
    %c0_i32 = arith.constant 0 : i32
    %c0_i32_0 = arith.constant 0 : i32
    %c0_i32_1 = arith.constant 0 : i32
    return %c0_i32, %c0_i32_0 : i32, i32
  }
  func.func @transform_7(%arg0: i32) -> (i32, i32) {
    %c0_i32 = arith.constant 0 : i32
    %c0_i32_0 = arith.constant 0 : i32
    %c0_i32_1 = arith.constant 0 : i32
    return %c0_i32, %c0_i32_0 : i32, i32
  }
  func.func @transform_8(%arg0: i32) -> (i32, i32) {
    %c0_i32 = arith.constant 0 : i32
    %c0_i32_0 = arith.constant 0 : i32
    %c0_i32_1 = arith.constant 0 : i32
    return %c0_i32, %c0_i32_0 : i32, i32
  }
  func.func @transform_9(%arg0: i32) -> (i32, i32) {
    %c0_i32 = arith.constant 0 : i32
    %c0_i32_0 = arith.constant 0 : i32
    %c0_i32_1 = arith.constant 0 : i32
    return %c0_i32, %c0_i32_0 : i32, i32
  }
  func.func @transform_10(%arg0: i32) -> (i32, i32) {
    %c0_i32 = arith.constant 0 : i32
    %c0_i32_0 = arith.constant 0 : i32
    %c0_i32_1 = arith.constant 0 : i32
    return %c0_i32, %c0_i32_0 : i32, i32
  }
  func.func @transform_11(%arg0: i32) -> (i32, i32) {
    %c0_i32 = arith.constant 0 : i32
    %c0_i32_0 = arith.constant 0 : i32
    %c0_i32_1 = arith.constant 0 : i32
    return %c0_i32, %c0_i32_0 : i32, i32
  }
}

</mosaic_0001>

<bundles_post_ra>
// kernel: tpu_custom_call.1
= control target key start
LH: loop header
LB: loop body
LE: loop exit
PB: predicated region body
PF: predicated region fallthrough
CT: control target
= control target key end

     0   :  { %16 = vsyncpa [#allocation5], 0  ;;  %s1916_s0 = inlined_call_operand.vmem [shape: f32[16,4], index: 0, kind: input, shape index: {}]   ;;  %s1917_s1 = inlined_call_operand.vmem [shape: f32[4,96], index: 1, kind: input, shape index: {}]   ;;  %s1918_s2 = inlined_call_operand.vmem [shape: f32[32,96], index: 2, kind: input, shape index: {}]   ;;  %s1919_s3 = inlined_call_operand.vmem [shape: f32[1,96], index: 3, kind: input, shape index: {}]   ;;  %s1920_s4 = inlined_call_operand.vmem [shape: f32[1,96], index: 4, kind: input, shape index: {}]   ;;  %s1921_s5 = inlined_call_operand.hbm [shape: f32[32,96], index: 5, kind: input, shape index: {}]   ;;  %s1922_s6 = inlined_call_operand.hbm [shape: f32[32,96], index: 6, kind: input, shape index: {}]   ;;  %s1923_s7 = inlined_call_operand.vmem [shape: f32[1,96], index: 7, kind: input, shape index: {}]   ;;  %s1924_s8 = inlined_call_operand.vmem [shape: f32[1,96], index: 8, kind: input, shape index: {}]   ;;  %s1925_s9 = inlined_call_operand.vmem [shape: f32[32,5], index: 9, kind: input, shape index: {}]   ;;  %s1926_s10 = inlined_call_operand.vmem [shape: f32[1,5], index: 10, kind: input, shape index: {}]   ;;  %s1927_s11 = inlined_call_operand.hbm [shape: f32[4,5], index: 11, kind: output, shape index: {}]  }
   0x1   :  { %17 = vsyncpa [#allocation8], 0 }
   0x2   :  { %18 = vsyncpa [#allocation6], 0  ;;  %s33_s19 = sshll.u32 %s1921_s5, 4  ;;  %s1559_s20 = smov [#allocation4]   ;;  %s34_s19 = int_to_ptr.hbm [resolvable:$true] %s33_s19 }
   0x3   :  { %s35_s21 = sshll.u32 %s1559_s20, 4  ;;  %s46_s24 = sshll.u32 %s1922_s6, 4  ;;  %s36_s21 = int_to_ptr.vmem [resolvable:$true] %s35_s21  ;;  %s47_s24 = int_to_ptr.hbm [resolvable:$true] %s46_s24 }
   0x4   :  { %s1560_s25 = smov 128   ;;  %s1561_s26 = smov 8  }
   0x5   :  { %41 = dma.hbm_to_vmem [thread:$0]  %s34_s19, 512, %s36_s21, [#allocation5], %s1560_s25, %s1560_s25, %s1561_s26  }
   0x6   :  { %s1562_s27 = smov [#allocation7]  }
   0x7   :  { %s48_s28 = sshll.u32 %s1562_s27, 4  ;;  %s49_s28 = int_to_ptr.vmem [resolvable:$true] %s48_s28 }
   0x8   :  { %54 = dma.hbm_to_vmem [thread:$0]  %s47_s24, 512, %s49_s28, [#allocation8], %s1560_s25, %s1560_s25, %s1561_s26  }
   0x9   :  { %1553 = dma.done.wait [#allocation5], 512  }
   0xa   :  { %1554 = vsyncadd [#allocation5], 4294966784 }
   0xb   :  { %1555 = dma.done.wait [#allocation8], 512  }
   0xc   :  { %1556 = vsyncadd [#allocation8], 4294966784  ;;  %vm89_vm0 = vcmask 1043456   ;;  %v76_v0 = vld [vmem:[%s1918_s2 + $0x18] sm:$0xff]  ;;  %v75_v1 = vld [vmem:[%s1918_s2 + $0x10] sm:$0xff]  ;;  %vm82_vm1 = vcmask 31744  }
   0xd   :  { %136 = vmatpush.msra.mxu1 %v76_v0  ;;  %v77_v2 = vld [vmem:[%s1917_s1] sm:$0xf]  ;;  %203 = vmatpush.msra.mxu2 %v76_v0  ;;  %v74_v4 = vld [vmem:[%s1918_s2 + $0x8] sm:$0xff]  ;;  %v1563_v6 = vmov 0.0   ;;  %s1564_s20 = smov 64   ;;  %vm187_vm6 = vcmask 254976  }
   0xe   :  { %v71_v3 = vld [vmem:[%s1916_s0] sm:$0xff]  ;;  %1336 = vmatpush.msk.msra.mxu0 %vm89_vm0, %v77_v2  ;;  %277 = vmatpush.msra.mxu3 %v76_v0  ;;  %vm120_vm7 = vcmask 261120   ;;  %s1566_s14 = smov [#allocation9]   ;;  %s1325_s18 = sshll.u32 %s1927_s11, 4  ;;  %s1326_s18 = int_to_ptr.hbm [resolvable:$true] %s1325_s18 }
   0xf   :  { %137 = vmatpush.msra.mxu1 %v75_v1  ;;  %1337 = vmatmul.msk.f32.vlgmr.msra.gmra.mxu0 %vm82_vm1, %v71_v3  ;;  %v73_v5 = vld [vmem:[%s1918_s2] sm:$0xff]  ;;  %s1323_s15 = sshll.u32 %s1566_s14, 4  ;;  %s1324_s15 = int_to_ptr.vmem [resolvable:$true] %s1323_s15 }
  0x10   :  { %204 = vmatpush.msra.mxu2 %v75_v1  ;;  %278 = vmatpush.msra.mxu3 %v75_v1  ;;  %v1656_v7 = vld [vmem:[%s1920_s4] ss:$0 sm:$0xff] }
  0x11   :  { %138 = vmatpush.msra.mxu1 %v74_v4  ;;  %565 = vmatpush.msrb.mxu0 %v76_v0  ;;  %v1663_v10 = vld [vmem:[%s1919_s3] ss:$0 sm:$0xff]  ;;  %s1565_s3 = smov 96  }
  0x12   :  { %205 = vmatpush.msra.mxu2 %v74_v4  ;;  %279 = vmatpush.msra.mxu3 %v74_v4 }
  0x13   :  { %139 = vmatpush.msra.mxu1 %v73_v5  ;;  %566 = vmatpush.msrb.mxu0 %v75_v1 }
  0x14   :  { %140 = vmatmul.f32.vlgmr.msra.gmra.mxu1 %v1563_v6  ;;  %206 = vmatpush.msra.mxu2 %v73_v5 }
  0x15   :  { %280 = vmatpush.msra.mxu3 %v73_v5  ;;  %351 = vmatpush.msrb.mxu1 %v76_v0 }
  0x16   :  { %425 = vmatpush.msrb.mxu2 %v76_v0  ;;  %567 = vmatpush.msrb.mxu0 %v74_v4 }
  0x17   :  { %492 = vmatpush.msrb.mxu3 %v76_v0  ;;  %352 = vmatpush.msrb.mxu1 %v75_v1 }
  0x18   :  { %426 = vmatpush.msrb.mxu2 %v75_v1  ;;  %568 = vmatpush.msrb.mxu0 %v73_v5 }
  0x19   :  { %493 = vmatpush.msrb.mxu3 %v75_v1  ;;  %353 = vmatpush.msrb.mxu1 %v74_v4 }
  0x1a   :  { %427 = vmatpush.msrb.mxu2 %v74_v4 }
  0x1b   :  { %494 = vmatpush.msrb.mxu3 %v74_v4  ;;  %354 = vmatpush.msrb.mxu1 %v73_v5 }
  0x1c   :  { %428 = vmatpush.msrb.mxu2 %v73_v5 }
  0x1d   :  { %495 = vmatpush.msrb.mxu3 %v73_v5  ;;  %638 = vmatpush.msra.mxu1 %v76_v0 }
  0x1f   :  { %639 = vmatpush.msra.mxu1 %v75_v1 }
  0x21   :  { %640 = vmatpush.msra.mxu1 %v74_v4 }
  0x23   :  { %641 = vmatpush.msra.mxu1 %v73_v5 }
  0x8c   :  { %v110_v11 = vpop.f32.mrf.mxu0 }
  0x8d   :  { %v1666_v12 = vadd.f32 %v1663_v10, %v110_v11 }
  0x91   :  { %v141_v8 = vpop.f32.mrf.mxu1 }
  0x92   :  { %v142_v9 = vadd.f32 %v1656_v7, %v141_v8 }
  0x94   :  { %165 = vrot.lane.b32.xlu0 %v142_v9, %s1564_s20  ;;  %v144_v13 = vadd.f32 %v142_v9, %v1666_v12 }
  0x96   :  { %v1339_v14 = vmul.f32 -1.442695, %v144_v13 }
  0x98   :  { %1385 = vpow2.f32 %v1339_v14 }
  0x9e   :  { %v1386_v15 = vpop.eup %1385 }
  0x9f   :  { %v148_v16 = vadd.f32 1.0, %v1386_v15 }
  0xa1   :  { %1387 = vrcp.f32 %v148_v16  ;;  %v160_v22 = vand.u32 2147483648, %v148_v16  ;;  %vm154_vm3 = vweird.f32 %v148_v16  ;;  %v158_v23 = vand.u32 2147483647, %v148_v16 }
  0xa3   :  { %v161_v25 = vor.u32 1.1754944e-38, %v160_v22  ;;  %vm159_vm5 = vcmp.eq.f32.partialorder %v158_v23, 8.507059e+37 }
  0xa7   :  { %v1388_v17 = vpop.eup %1387 }
  0xa8   :  { %v150_v18 = vmul.f32 %v1388_v17, %v148_v16  ;;  %vm155_vm2 = vweird.f32 %v1388_v17 }
  0xa9   :  { %vm156_vm4 = vmor %vm154_vm3, %vm155_vm2 }
  0xaa   :  { %v151_v19 = vsub.f32 1.0, %v150_v18 }
  0xac   :  { %v152_v20 = vmul.f32 %v1388_v17, %v151_v19 }
  0xae   :  { %v153_v21 = vadd.f32 %v1388_v17, %v152_v20 }
  0xb0   :  { %v157_v24 = vsel %vm156_vm4, %v1388_v17, %v153_v21 }
  0xb1   :  { %v162_v27 = vsel %vm159_vm5, %v161_v25, %v157_v24 }
  0xb2   :  { %v175_v32 = vsub.f32 1.0, %v162_v27  ;;  %v181_v34 = vmul.f32 0.0, %v162_v27 }
 0x106   :  { %v166_v26 = vpop.permute.xlu0 %165 }
 0x107   :  { %v168_v28 = vmul.f32 %v166_v26, %v162_v27 }
 0x109   :  { %170 = vrot.lane.b32.xlu0 %v168_v28, %s1564_s20 }
 0x17b   :  { %v171_v29 = vpop.permute.xlu0 %170 }
 0x17c   :  { %v173_v30 = vadd.f32 %v171_v29, %v1666_v12 }
 0x17e   :  { %1389 = vtanh.f32 %v173_v30 }
 0x184   :  { %v1390_v31 = vpop.eup %1389 }
 0x185   :  { %177 = vrot.lane.b32.xlu1 %v1390_v31, %s1565_s3 }
 0x1f7   :  { %v178_v33 = vpop.permute.xlu1 %177 }
 0x1f8   :  { %v180_v35 = vmul.f32 %v178_v33, %v175_v32 }
 0x1fa   :  { %v182_v36 = vadd.f32 %v181_v34, %v180_v35 }
 0x1fc   :  { %184 = vrot.lane.b32.xlu1 %v182_v36, %s1565_s3  ;;  %v250_v53 = vrot.slane %v182_v36, 6 }
 0x26e   :  { %v185_v37 = vpop.permute.xlu1 %184 }
 0x26f   :  { %188 = vst.msk [vmem:[#allocation2] sm:$0x3] %vm187_vm6, %v185_v37  ;;  %1340 = vmatmul.msk.f32.vlgmr.msra.gmra.mxu2 %vm120_vm7, %v185_v37 }
 0x2f2   :  { %v208_v38 = vpop.f32.mrf.mxu2 }
 0x2f3   :  { %v209_v39 = vadd.f32 %v1656_v7, %v208_v38 }
 0x2f5   :  { %v212_v40 = vrot.slane %v209_v39, 6 }
 0x2f7   :  { %v214_v41 = vadd.f32 %v212_v40, %v1666_v12  ;;  %234 = vrot.lane.b32.xlu2 %v212_v40, %s1564_s20 }
 0x2f9   :  { %v1341_v42 = vmul.f32 -1.442695, %v214_v41 }
 0x2fb   :  { %1391 = vpow2.f32 %v1341_v42 }
 0x301   :  { %v1392_v43 = vpop.eup %1391 }
 0x302   :  { %v218_v44 = vadd.f32 1.0, %v1392_v43 }
 0x304   :  { %1393 = vrcp.f32 %v218_v44  ;;  %v230_v48 = vand.u32 2147483648, %v218_v44  ;;  %v228_v50 = vand.u32 2147483647, %v218_v44  ;;  %vm224_vm9 = vweird.f32 %v218_v44 }
 0x306   :  { %v231_v52 = vor.u32 1.1754944e-38, %v230_v48  ;;  %vm229_vm11 = vcmp.eq.f32.partialorder %v228_v50, 8.507059e+37 }
 0x30a   :  { %v1394_v45 = vpop.eup %1393 }
 0x30b   :  { %v220_v46 = vmul.f32 %v1394_v45, %v218_v44  ;;  %vm225_vm8 = vweird.f32 %v1394_v45 }
 0x30c   :  { %vm226_vm10 = vmor %vm224_vm9, %vm225_vm8 }
 0x30d   :  { %v221_v47 = vsub.f32 1.0, %v220_v46 }
 0x30f   :  { %v222_v49 = vmul.f32 %v1394_v45, %v221_v47 }
 0x311   :  { %v223_v51 = vadd.f32 %v1394_v45, %v222_v49 }
 0x313   :  { %v227_v54 = vsel %vm226_vm10, %v1394_v45, %v223_v51  ;;  %vm258_vm10 = vcmask 257026  }
 0x314   :  { %v232_v55 = vsel %vm229_vm11, %v231_v52, %v227_v54  ;;  %vm332_vm11 = vcmask 259076  }
 0x315   :  { %v252_v56 = vmul.f32 %v250_v53, %v232_v55  ;;  %v244_v62 = vsub.f32 1.0, %v232_v55 }
 0x351   :  { %v235_v57 = vpop.permute.xlu2 %234 }
 0x352   :  { %v237_v58 = vmul.f32 %v235_v57, %v232_v55 }
 0x354   :  { %239 = vrot.lane.b32.xlu2 %v237_v58, %s1564_s20 }
 0x3ae   :  { %v240_v59 = vpop.permute.xlu2 %239 }
 0x3af   :  { %v242_v60 = vadd.f32 %v240_v59, %v1666_v12 }
 0x3b1   :  { %1395 = vtanh.f32 %v242_v60 }
 0x3b7   :  { %v1396_v61 = vpop.eup %1395 }
 0x3b8   :  { %246 = vrot.lane.b32.xlu0 %v1396_v61, %s1565_s3 }
 0x42a   :  { %v247_v63 = vpop.permute.xlu0 %246 }
 0x42b   :  { %v249_v0 = vmul.f32 %v247_v63, %v244_v62 }
 0x42d   :  { %v1681_v1 = vadd.f32 %v252_v56, %v249_v0 }
 0x42f   :  { %v260_v2 = vrot.slane %v1681_v1, 2  ;;  %v324_v31 = vrot.slane %v1681_v1, 6 }
 0x431   :  { %261 = vrot.lane.b32.xlu1 %v260_v2, %s1565_s3 }
 0x4a3   :  { %v262_v3 = vpop.permute.xlu1 %261 }
 0x4a4   :  { %1342 = vmatmul.msk.f32.vlgmr.msra.gmra.mxu3 %vm120_vm7, %v262_v3 }
 0x527   :  { %v282_v4 = vpop.f32.mrf.mxu3 }
 0x528   :  { %v283_v5 = vadd.f32 %v1656_v7, %v282_v4  ;;  %v72_v4 = vld [vmem:[%s1916_s0 + $0x8] sm:$0xff] }
 0x529   :  { %1338 = vmatmul.msk.f32.gmra.mxu0 %vm82_vm1, %v72_v4 }
 0x52a   :  { %v286_v8 = vrot.slane %v283_v5, 4 }
 0x52c   :  { %308 = vrot.lane.b32.xlu2 %v286_v8, %s1564_s20  ;;  %v288_v9 = vadd.f32 %v286_v8, %v1666_v12 }
 0x52e   :  { %v1343_v11 = vmul.f32 -1.442695, %v288_v9 }
 0x530   :  { %1397 = vpow2.f32 %v1343_v11 }
 0x536   :  { %v1398_v13 = vpop.eup %1397 }
 0x537   :  { %v292_v14 = vadd.f32 1.0, %v1398_v13 }
 0x539   :  { %1399 = vrcp.f32 %v292_v14  ;;  %v304_v20 = vand.u32 2147483648, %v292_v14  ;;  %vm298_vm13 = vweird.f32 %v292_v14  ;;  %v302_v21 = vand.u32 2147483647, %v292_v14 }
 0x53b   :  { %v305_v23 = vor.u32 1.1754944e-38, %v304_v20  ;;  %vm303_vm15 = vcmp.eq.f32.partialorder %v302_v21, 8.507059e+37 }
 0x53f   :  { %v1400_v15 = vpop.eup %1399 }
 0x540   :  { %v294_v16 = vmul.f32 %v1400_v15, %v292_v14  ;;  %vm299_vm12 = vweird.f32 %v1400_v15 }
 0x541   :  { %vm300_vm14 = vmor %vm298_vm13, %vm299_vm12  ;;  %vm406_vm12 = vcmask 261126  }
 0x542   :  { %v295_v17 = vsub.f32 1.0, %v294_v16 }
 0x544   :  { %v296_v18 = vmul.f32 %v1400_v15, %v295_v17 }
 0x546   :  { %v297_v19 = vadd.f32 %v1400_v15, %v296_v18 }
 0x548   :  { %v301_v22 = vsel %vm300_vm14, %v1400_v15, %v297_v19 }
 0x549   :  { %v306_v25 = vsel %vm303_vm15, %v305_v23, %v301_v22 }
 0x54a   :  { %v318_v30 = vsub.f32 1.0, %v306_v25  ;;  %v326_v33 = vmul.f32 %v324_v31, %v306_v25 }
 0x586   :  { %v309_v24 = vpop.permute.xlu2 %308 }
 0x587   :  { %v311_v26 = vmul.f32 %v309_v24, %v306_v25 }
 0x589   :  { %313 = vrot.lane.b32.xlu0 %v311_v26, %s1564_s20 }
 0x5a6   :  { %v113_v9 = vpop.f32.mrf.mxu0 }
 0x5a7   :  { %v1714_v11 = vadd.f32 %v1663_v10, %v113_v9 }
 0x5fb   :  { %v314_v27 = vpop.permute.xlu0 %313 }
 0x5fc   :  { %v316_v28 = vadd.f32 %v314_v27, %v1666_v12 }
 0x5fe   :  { %1401 = vtanh.f32 %v316_v28 }
 0x604   :  { %v1402_v29 = vpop.eup %1401 }
 0x605   :  { %320 = vrot.lane.b32.xlu1 %v1402_v29, %s1565_s3 }
 0x677   :  { %v321_v32 = vpop.permute.xlu1 %320 }
 0x678   :  { %v323_v34 = vmul.f32 %v321_v32, %v318_v30 }
 0x67a   :  { %v1693_v35 = vadd.f32 %v326_v33, %v323_v34 }
 0x67c   :  { %v334_v36 = vrot.slane %v1693_v35, 4  ;;  %v398_v61 = vrot.slane %v1693_v35, 6 }
 0x67e   :  { %335 = vrot.lane.b32.xlu2 %v334_v36, %s1565_s3 }
 0x6d8   :  { %v336_v37 = vpop.permute.xlu2 %335 }
 0x6d9   :  { %1344 = vmatmul.msk.f32.vlgmr.msrb.gmra.mxu1 %vm120_vm7, %v336_v37 }
 0x756   :  { %v356_v38 = vpop.f32.mrf.mxu1 }
 0x757   :  { %v357_v39 = vadd.f32 %v1656_v7, %v356_v38  ;;  %v1731_v38 = vld [vmem:[#allocation7 + $0x18] sm:$0xff] }
 0x758   :  { %754 = vmatpush.msra.mxu3 %v1731_v38  ;;  %818 = vmatpush.msra.mxu0 %v1731_v38 }
 0x759   :  { %v360_v40 = vrot.slane %v357_v39, 2  ;;  %v1733_v39 = vld [vmem:[#allocation7 + $0x10] sm:$0xff]  ;;  %887 = vmatpush.msrb.mxu1 %v1731_v38 }
 0x75a   :  { %755 = vmatpush.msra.mxu3 %v1733_v39  ;;  %819 = vmatpush.msra.mxu0 %v1733_v39 }
 0x75b   :  { %382 = vrot.lane.b32.xlu0 %v360_v40, %s1564_s20  ;;  %v362_v41 = vadd.f32 %v360_v40, %v1666_v12  ;;  %v1742_v40 = vld [vmem:[#allocation7] sm:$0xff]  ;;  %888 = vmatpush.msrb.mxu1 %v1733_v39 }
 0x75d   :  { %v1345_v42 = vmul.f32 -1.442695, %v362_v41  ;;  %v704_v41 = vld [vmem:[#allocation4 + $0x18] sm:$0xff] }
 0x75e   :  { %727 = vmatpush.msra.mxu2 %v704_v41 }
 0x75f   :  { %1403 = vpow2.f32 %v1345_v42  ;;  %v703_v42 = vld [vmem:[#allocation4 + $0x10] sm:$0xff] }
 0x760   :  { %728 = vmatpush.msra.mxu2 %v703_v42 }
 0x765   :  { %v1404_v43 = vpop.eup %1403 }
 0x766   :  { %v366_v44 = vadd.f32 1.0, %v1404_v43  ;;  %v702_v43 = vld [vmem:[#allocation4 + $0x8] sm:$0xff] }
 0x767   :  { %729 = vmatpush.msra.mxu2 %v702_v43 }
 0x768   :  { %1405 = vrcp.f32 %v366_v44  ;;  %v378_v50 = vand.u32 2147483648, %v366_v44  ;;  %vm372_vm2 = vweird.f32 %v366_v44  ;;  %v376_v51 = vand.u32 2147483647, %v366_v44 }
 0x76a   :  { %v379_v53 = vor.u32 1.1754944e-38, %v378_v50  ;;  %vm377_vm4 = vcmp.eq.f32.partialorder %v376_v51, 8.507059e+37 }
 0x76e   :  { %v1406_v45 = vpop.eup %1405 }
 0x76f   :  { %v368_v46 = vmul.f32 %v1406_v45, %v366_v44  ;;  %vm373_vm0 = vweird.f32 %v1406_v45  ;;  %v701_v44 = vld [vmem:[#allocation4] sm:$0xff] }
 0x770   :  { %vm374_vm3 = vmor %vm372_vm2, %vm373_vm0  ;;  %730 = vmatpush.msra.mxu2 %v701_v44 }
 0x771   :  { %v369_v47 = vsub.f32 1.0, %v368_v46 }
 0x773   :  { %v370_v48 = vmul.f32 %v1406_v45, %v369_v47 }
 0x775   :  { %v371_v49 = vadd.f32 %v1406_v45, %v370_v48 }
 0x777   :  { %v375_v52 = vsel %vm374_vm3, %v1406_v45, %v371_v49 }
 0x778   :  { %v380_v55 = vsel %vm377_vm4, %v379_v53, %v375_v52 }
 0x779   :  { %v392_v60 = vsub.f32 1.0, %v380_v55  ;;  %v400_v63 = vmul.f32 %v398_v61, %v380_v55 }
 0x7cd   :  { %v383_v54 = vpop.permute.xlu0 %382 }
 0x7ce   :  { %v385_v56 = vmul.f32 %v383_v54, %v380_v55 }
 0x7d0   :  { %387 = vrot.lane.b32.xlu1 %v385_v56, %s1564_s20 }
 0x842   :  { %v388_v57 = vpop.permute.xlu1 %387 }
 0x843   :  { %v390_v58 = vadd.f32 %v388_v57, %v1666_v12 }
 0x845   :  { %1407 = vtanh.f32 %v390_v58 }
 0x84b   :  { %v1408_v59 = vpop.eup %1407 }
 0x84c   :  { %394 = vrot.lane.b32.xlu2 %v1408_v59, %s1565_s3 }
 0x8a6   :  { %v395_v62 = vpop.permute.xlu2 %394 }
 0x8a7   :  { %v397_v0 = vmul.f32 %v395_v62, %v392_v60 }
 0x8a9   :  { %v401_v2 = vadd.f32 %v400_v63, %v397_v0 }
 0x8ab   :  { %v408_v3 = vrot.slane %v401_v2, 6 }
 0x8ad   :  { %409 = vrot.lane.b32.xlu0 %v408_v3, %s1565_s3 }
 0x91f   :  { %v410_v12 = vpop.permute.xlu0 %409 }
 0x920   :  { %1346 = vmatmul.msk.f32.vlgmr.msrb.gmra.mxu2 %vm120_vm7, %v410_v12 }
 0x921   :  { %1159 = vmatpush.msrb.mxu2 %v1731_v38 }
 0x923   :  { %1160 = vmatpush.msrb.mxu2 %v1733_v39 }
 0x9a3   :  { %v430_v5 = vpop.f32.mrf.mxu2 }
 0x9a4   :  { %v431_v8 = vadd.f32 %v1656_v7, %v430_v5  ;;  %v1782_v5 = vld [vmem:[%s1923_s7] ss:$0 sm:$0xff] }
 0x9a6   :  { %454 = vrot.lane.b32.xlu1 %v431_v8, %s1564_s20  ;;  %v433_v13 = vadd.f32 %v431_v8, %v1714_v11 }
 0x9a8   :  { %v1347_v14 = vmul.f32 -1.442695, %v433_v13 }
 0x9aa   :  { %1409 = vpow2.f32 %v1347_v14 }
 0x9b0   :  { %v1410_v15 = vpop.eup %1409 }
 0x9b1   :  { %v437_v16 = vadd.f32 1.0, %v1410_v15 }
 0x9b3   :  { %1411 = vrcp.f32 %v437_v16  ;;  %v449_v22 = vand.u32 2147483648, %v437_v16  ;;  %vm443_vm5 = vweird.f32 %v437_v16  ;;  %v447_v23 = vand.u32 2147483647, %v437_v16 }
 0x9b5   :  { %v450_v10 = vor.u32 1.1754944e-38, %v449_v22  ;;  %vm448_vm9 = vcmp.eq.f32.partialorder %v447_v23, 8.507059e+37 }
 0x9b9   :  { %v1412_v17 = vpop.eup %1411 }
 0x9ba   :  { %v439_v18 = vmul.f32 %v1412_v17, %v437_v16  ;;  %vm444_vm1 = vweird.f32 %v1412_v17 }
 0x9bb   :  { %vm445_vm8 = vmor %vm443_vm5, %vm444_vm1 }
 0x9bc   :  { %v440_v19 = vsub.f32 1.0, %v439_v18 }
 0x9be   :  { %v441_v20 = vmul.f32 %v1412_v17, %v440_v19 }
 0x9c0   :  { %v442_v21 = vadd.f32 %v1412_v17, %v441_v20 }
 0x9c2   :  { %v446_v24 = vsel %vm445_vm8, %v1412_v17, %v442_v21 }
 0x9c3   :  { %v451_v26 = vsel %vm448_vm9, %v450_v10, %v446_v24 }
 0x9c4   :  { %v464_v32 = vsub.f32 1.0, %v451_v26  ;;  %v471_v34 = vmul.f32 %v451_v26, %v408_v3 }
 0xa18   :  { %v455_v25 = vpop.permute.xlu1 %454 }
 0xa19   :  { %v457_v27 = vmul.f32 %v455_v25, %v451_v26 }
 0xa1b   :  { %459 = vrot.lane.b32.xlu2 %v457_v27, %s1564_s20 }
 0xa23   :  { %255 = vrot.lane.b32.xlu2 %v1681_v1, %s1565_s3 }
 0xa75   :  { %v460_v28 = vpop.permute.xlu2 %459 }
 0xa76   :  { %v462_v29 = vadd.f32 %v460_v28, %v1714_v11 }
 0xa78   :  { %1413 = vtanh.f32 %v462_v29 }
 0xa7d   :  { %v256_v30 = vpop.permute.xlu2 %255 }
 0xa7e   :  { %v1414_v31 = vpop.eup %1413  ;;  %259 = vst.msk [vmem:[#allocation2] sm:$0xc] %vm258_vm10, %v256_v30 }
 0xa7f   :  { %466 = vrot.lane.b32.xlu0 %v1414_v31, %s1565_s3 }
 0xa87   :  { %329 = vrot.lane.b32.xlu0 %v1693_v35, %s1565_s3  ;;  %v1737_v35 = vld [vmem:[#allocation7 + $0x8] sm:$0xff] }
 0xa88   :  { %756 = vmatpush.msra.mxu3 %v1737_v35  ;;  %820 = vmatpush.msra.mxu0 %v1737_v35 }
 0xa89   :  { %889 = vmatpush.msrb.mxu1 %v1737_v35  ;;  %1161 = vmatpush.msrb.mxu2 %v1737_v35 }
 0xa8a   :  { %757 = vmatpush.msra.mxu3 %v1742_v40  ;;  %821 = vmatpush.msra.mxu0 %v1742_v40 }
 0xa8b   :  { %890 = vmatpush.msrb.mxu1 %v1742_v40  ;;  %1162 = vmatpush.msrb.mxu2 %v1742_v40 }
 0xaf1   :  { %v467_v33 = vpop.permute.xlu0 %466 }
 0xaf2   :  { %v469_v36 = vmul.f32 %v467_v33, %v464_v32 }
 0xaf4   :  { %v1725_v37 = vadd.f32 %v471_v34, %v469_v36 }
 0xaf6   :  { %474 = vrot.lane.b32.xlu1 %v1725_v37, %s1565_s3 }
 0xaf9   :  { %v330_v1 = vpop.permute.xlu0 %329 }
 0xafa   :  { %333 = vst.msk [vmem:[#allocation2] sm:$0x30] %vm332_vm11, %v330_v1 }
 0xafe   :  { %403 = vrot.lane.b32.xlu1 %v401_v2, %s1565_s3  ;;  %v539_v2 = vrot.slane %v1725_v37, 6 }
 0xb68   :  { %v475_v45 = vpop.permute.xlu1 %474 }
 0xb69   :  { %477 = vst.msk [vmem:[#allocation2 + $0x8] sm:$0x3] %vm187_vm6, %v475_v45  ;;  %1348 = vmatmul.msk.f32.vlgmr.msrb.gmra.mxu3 %vm120_vm7, %v475_v45 }
 0xb6a   :  { %956 = vmatpush.msrb.mxu3 %v1731_v38 }
 0xb6c   :  { %957 = vmatpush.msrb.mxu3 %v1733_v39 }
 0xb6e   :  { %958 = vmatpush.msrb.mxu3 %v1737_v35 }
 0xb70   :  { %v404_v46 = vpop.permute.xlu1 %403  ;;  %959 = vmatpush.msrb.mxu3 %v1742_v40 }
 0xb71   :  { %407 = vst.msk [vmem:[#allocation2] sm:$0xc0] %vm406_vm12, %v404_v46  ;;  %758 = vmatmul.f32.vlgmr.msra.gmra.mxu3 %v1563_v6  ;;  %v1774_v6 = vld [vmem:[%s1924_s8] ss:$0 sm:$0xff] }
 0xb72   :  { %1228 = vmatpush.msra.mxu3 %v1731_v38 }
 0xb74   :  { %1229 = vmatpush.msra.mxu3 %v1733_v39 }
 0xb76   :  { %1230 = vmatpush.msra.mxu3 %v1737_v35 }
 0xb78   :  { %v695_v47 = vld [vmem:[#allocation2] sm:$0xff]  ;;  %1231 = vmatpush.msra.mxu3 %v1742_v40 }
 0xb79   :  { %1354 = vmatmul.msk.f32.vlgmr.msra.gmra.mxu2 %vm120_vm7, %v695_v47 }
 0xbec   :  { %v497_v48 = vpop.f32.mrf.mxu3 }
 0xbed   :  { %v498_v49 = vadd.f32 %v1656_v7, %v497_v48 }
 0xbef   :  { %v501_v50 = vrot.slane %v498_v49, 6 }
 0xbf1   :  { %v503_v51 = vadd.f32 %v501_v50, %v1714_v11  ;;  %523 = vrot.lane.b32.xlu2 %v501_v50, %s1564_s20 }
 0xbf3   :  { %v1349_v52 = vmul.f32 -1.442695, %v503_v51 }
 0xbf4   :  { %v759_v53 = vpop.f32.mrf.mxu3 }
 0xbf5   :  { %1415 = vpow2.f32 %v1349_v52  ;;  %v760_v54 = vadd.f32 %v1774_v6, %v759_v53 }
 0xbf7   :  { %783 = vrot.lane.b32.xlu0 %v760_v54, %s1564_s20 }
 0xbfb   :  { %v1416_v55 = vpop.eup %1415 }
 0xbfc   :  { %v507_v56 = vadd.f32 1.0, %v1416_v55  ;;  %v732_v8 = vpop.f32.mrf.mxu2 }
 0xbfd   :  { %v1785_v9 = vadd.f32 %v1782_v5, %v732_v8 }
 0xbfe   :  { %1417 = vrcp.f32 %v507_v56  ;;  %v519_v60 = vand.u32 2147483648, %v507_v56  ;;  %v517_v62 = vand.u32 2147483647, %v507_v56  ;;  %vm513_vm13 = vweird.f32 %v507_v56 }
 0xbff   :  { %v762_v13 = vadd.f32 %v760_v54, %v1785_v9 }
 0xc00   :  { %v520_v0 = vor.u32 1.1754944e-38, %v519_v60  ;;  %vm518_vm15 = vcmp.eq.f32.partialorder %v517_v62, 8.507059e+37 }
 0xc01   :  { %v1356_v14 = vmul.f32 -1.442695, %v762_v13 }
 0xc03   :  { %1419 = vpow2.f32 %v1356_v14 }
 0xc04   :  { %v1418_v57 = vpop.eup %1417 }
 0xc05   :  { %v509_v58 = vmul.f32 %v1418_v57, %v507_v56  ;;  %vm514_vm6 = vweird.f32 %v1418_v57 }
 0xc06   :  { %vm515_vm14 = vmor %vm513_vm13, %vm514_vm6 }
 0xc07   :  { %v510_v59 = vsub.f32 1.0, %v509_v58 }
 0xc09   :  { %v511_v61 = vmul.f32 %v1418_v57, %v510_v59  ;;  %v1420_v15 = vpop.eup %1419 }
 0xc0a   :  { %v766_v16 = vadd.f32 1.0, %v1420_v15 }
 0xc0b   :  { %v512_v63 = vadd.f32 %v1418_v57, %v511_v61 }
 0xc0c   :  { %1421 = vrcp.f32 %v766_v16  ;;  %v778_v24 = vand.u32 2147483648, %v766_v16  ;;  %vm772_vm2 = vweird.f32 %v766_v16  ;;  %v776_v10 = vand.u32 2147483647, %v766_v16 }
 0xc0d   :  { %v516_v3 = vsel %vm515_vm14, %v1418_v57, %v512_v63 }
 0xc0e   :  { %v521_v4 = vsel %vm518_vm15, %v520_v0, %v516_v3  ;;  %v779_v26 = vor.u32 1.1754944e-38, %v778_v24  ;;  %vm777_vm4 = vcmp.eq.f32.partialorder %v776_v10, 8.507059e+37 }
 0xc0f   :  { %v541_v12 = vmul.f32 %v539_v2, %v521_v4  ;;  %v533_v37 = vsub.f32 1.0, %v521_v4 }
 0xc12   :  { %v1422_v19 = vpop.eup %1421 }
 0xc13   :  { %v768_v20 = vmul.f32 %v1422_v19, %v766_v16  ;;  %vm773_vm0 = vweird.f32 %v1422_v19 }
 0xc14   :  { %vm774_vm3 = vmor %vm772_vm2, %vm773_vm0 }
 0xc15   :  { %v769_v21 = vsub.f32 1.0, %v768_v20 }
 0xc17   :  { %v770_v22 = vmul.f32 %v1422_v19, %v769_v21 }
 0xc19   :  { %v771_v23 = vadd.f32 %v1422_v19, %v770_v22 }
 0xc1b   :  { %v775_v25 = vsel %vm774_vm3, %v1422_v19, %v771_v23 }
 0xc1c   :  { %v780_v28 = vsel %vm777_vm4, %v779_v26, %v775_v25 }
 0xc1d   :  { %v793_v43 = vsub.f32 1.0, %v780_v28  ;;  %v799_v46 = vmul.f32 0.0, %v780_v28 }
 0xc4b   :  { %v524_v17 = vpop.permute.xlu2 %523 }
 0xc4c   :  { %v526_v18 = vmul.f32 %v524_v17, %v521_v4 }
 0xc4e   :  { %528 = vrot.lane.b32.xlu1 %v526_v18, %s1564_s20 }
 0xc69   :  { %v784_v27 = vpop.permute.xlu0 %783 }
 0xc6a   :  { %v786_v29 = vmul.f32 %v784_v27, %v780_v28 }
 0xc6c   :  { %788 = vrot.lane.b32.xlu2 %v786_v29, %s1564_s20 }
 0xcc0   :  { %v529_v30 = vpop.permute.xlu1 %528 }
 0xcc1   :  { %v531_v31 = vadd.f32 %v529_v30, %v1714_v11 }
 0xcc3   :  { %1423 = vtanh.f32 %v531_v31 }
 0xcc6   :  { %v789_v32 = vpop.permute.xlu2 %788 }
 0xcc7   :  { %v791_v33 = vadd.f32 %v789_v32, %v1785_v9 }
 0xcc9   :  { %v1424_v34 = vpop.eup %1423  ;;  %1425 = vtanh.f32 %v791_v33 }
 0xcca   :  { %535 = vrot.lane.b32.xlu0 %v1424_v34, %s1565_s3 }
 0xccf   :  { %v1426_v36 = vpop.eup %1425 }
 0xcd0   :  { %795 = vrot.lane.b32.xlu1 %v1426_v36, %s1565_s3 }
 0xd3c   :  { %v536_v1 = vpop.permute.xlu0 %535 }
 0xd3d   :  { %v538_v41 = vmul.f32 %v536_v1, %v533_v37 }
 0xd3f   :  { %v1794_v42 = vadd.f32 %v541_v12, %v538_v41 }
 0xd41   :  { %v548_v44 = vrot.slane %v1794_v42, 2 }
 0xd42   :  { %v796_v45 = vpop.permute.xlu1 %795 }
 0xd43   :  { %v798_v47 = vmul.f32 %v796_v45, %v793_v43  ;;  %549 = vrot.lane.b32.xlu2 %v548_v44, %s1565_s3  ;;  %v612_v44 = vrot.slane %v1794_v42, 6 }
 0xd45   :  { %v800_v48 = vadd.f32 %v799_v46, %v798_v47 }
 0xd47   :  { %802 = vrot.lane.b32.xlu0 %v800_v48, %s1565_s3  ;;  %v865_v8 = vrot.slane %v800_v48, 6 }
 0xd9d   :  { %v550_v49 = vpop.permute.xlu2 %549 }
 0xd9e   :  { %1350 = vmatmul.msk.f32.vlgmr.msrb.gmra.mxu0 %vm120_vm7, %v550_v49 }
 0xd9f   :  { %1025 = vmatpush.msrb.mxu0 %v1731_v38 }
 0xda1   :  { %1026 = vmatpush.msrb.mxu0 %v1733_v39 }
 0xda3   :  { %1027 = vmatpush.msrb.mxu0 %v1737_v35 }
 0xda5   :  { %1028 = vmatpush.msrb.mxu0 %v1742_v40 }
 0xdb9   :  { %v803_v50 = vpop.permute.xlu0 %802 }
 0xdba   :  { %1357 = vmatmul.msk.f32.vlgmr.msra.gmra.mxu0 %vm120_vm7, %v803_v50 }
 0xe1b   :  { %v570_v51 = vpop.f32.mrf.mxu0 }
 0xe1c   :  { %v571_v52 = vadd.f32 %v1656_v7, %v570_v51 }
 0xe1e   :  { %v574_v53 = vrot.slane %v571_v52, 4 }
 0xe20   :  { %596 = vrot.lane.b32.xlu1 %v574_v53, %s1564_s20  ;;  %v576_v16 = vadd.f32 %v574_v53, %v1714_v11 }
 0xe22   :  { %v1351_v17 = vmul.f32 -1.442695, %v576_v16 }
 0xe37   :  { %v823_v54 = vpop.f32.mrf.mxu0 }
 0xe38   :  { %v824_v55 = vadd.f32 %v1774_v6, %v823_v54 }
 0xe3a   :  { %v827_v56 = vrot.slane %v824_v55, 6 }
 0xe3c   :  { %v829_v57 = vadd.f32 %v827_v56, %v1785_v9  ;;  %849 = vrot.lane.b32.xlu2 %v827_v56, %s1564_s20 }
 0xe3e   :  { %v1358_v58 = vmul.f32 -1.442695, %v829_v57 }
 0xe40   :  { %1427 = vpow2.f32 %v1358_v58 }
 0xe46   :  { %v1428_v59 = vpop.eup %1427 }
 0xe47   :  { %v833_v60 = vadd.f32 1.0, %v1428_v59 }
 0xe49   :  { %1429 = vrcp.f32 %v833_v60  ;;  %v845_v0 = vand.u32 2147483648, %v833_v60  ;;  %v843_v3 = vand.u32 2147483647, %v833_v60  ;;  %vm839_vm5 = vweird.f32 %v833_v60 }
 0xe4a   :  { %1431 = vpow2.f32 %v1351_v17 }
 0xe4b   :  { %v846_v12 = vor.u32 1.1754944e-38, %v845_v0  ;;  %vm844_vm9 = vcmp.eq.f32.partialorder %v843_v3, 8.507059e+37 }
 0xe4f   :  { %v1430_v61 = vpop.eup %1429 }
 0xe50   :  { %v835_v62 = vmul.f32 %v1430_v61, %v833_v60  ;;  %vm840_vm1 = vweird.f32 %v1430_v61  ;;  %v1432_v18 = vpop.eup %1431 }
 0xe51   :  { %vm841_vm8 = vmor %vm839_vm5, %vm840_vm1  ;;  %v580_v19 = vadd.f32 1.0, %v1432_v18 }
 0xe52   :  { %v836_v63 = vsub.f32 1.0, %v835_v62 }
 0xe53   :  { %1433 = vrcp.f32 %v580_v19  ;;  %v592_v10 = vand.u32 2147483648, %v580_v19  ;;  %vm586_vm13 = vweird.f32 %v580_v19  ;;  %v590_v25 = vand.u32 2147483647, %v580_v19 }
 0xe54   :  { %v837_v2 = vmul.f32 %v1430_v61, %v836_v63 }
 0xe55   :  { %v593_v27 = vor.u32 1.1754944e-38, %v592_v10  ;;  %vm591_vm15 = vcmp.eq.f32.partialorder %v590_v25, 8.507059e+37 }
 0xe56   :  { %v838_v4 = vadd.f32 %v1430_v61, %v837_v2 }
 0xe58   :  { %v842_v13 = vsel %vm841_vm8, %v1430_v61, %v838_v4 }
 0xe59   :  { %v847_v14 = vsel %vm844_vm9, %v846_v12, %v842_v13  ;;  %v1434_v20 = vpop.eup %1433 }
 0xe5a   :  { %v867_v15 = vmul.f32 %v865_v8, %v847_v14  ;;  %v582_v21 = vmul.f32 %v1434_v20, %v580_v19  ;;  %vm587_vm6 = vweird.f32 %v1434_v20  ;;  %v859_v50 = vsub.f32 1.0, %v847_v14 }
 0xe5b   :  { %vm588_vm14 = vmor %vm586_vm13, %vm587_vm6 }
 0xe5c   :  { %v583_v22 = vsub.f32 1.0, %v582_v21 }
 0xe5e   :  { %v584_v23 = vmul.f32 %v1434_v20, %v583_v22 }
 0xe60   :  { %v585_v24 = vadd.f32 %v1434_v20, %v584_v23 }
 0xe62   :  { %v589_v26 = vsel %vm588_vm14, %v1434_v20, %v585_v24 }
 0xe63   :  { %v594_v29 = vsel %vm591_vm15, %v593_v27, %v589_v26 }
 0xe64   :  { %v606_v43 = vsub.f32 1.0, %v594_v29  ;;  %v614_v46 = vmul.f32 %v612_v44, %v594_v29 }
 0xe92   :  { %v597_v28 = vpop.permute.xlu1 %596 }
 0xe93   :  { %v599_v30 = vmul.f32 %v597_v28, %v594_v29 }
 0xe95   :  { %601 = vrot.lane.b32.xlu0 %v599_v30, %s1564_s20 }
 0xe96   :  { %v850_v31 = vpop.permute.xlu2 %849 }
 0xe97   :  { %v852_v32 = vmul.f32 %v850_v31, %v847_v14 }
 0xe99   :  { %854 = vrot.lane.b32.xlu1 %v852_v32, %s1564_s20 }
 0xf07   :  { %v602_v33 = vpop.permute.xlu0 %601 }
 0xf08   :  { %v604_v34 = vadd.f32 %v602_v33, %v1714_v11 }
 0xf0a   :  { %1435 = vtanh.f32 %v604_v34 }
 0xf0b   :  { %v855_v36 = vpop.permute.xlu1 %854 }
 0xf0c   :  { %v857_v37 = vadd.f32 %v855_v36, %v1785_v9 }
 0xf0e   :  { %1437 = vtanh.f32 %v857_v37 }
 0xf10   :  { %v1436_v1 = vpop.eup %1435 }
 0xf11   :  { %608 = vrot.lane.b32.xlu2 %v1436_v1, %s1565_s3 }
 0xf14   :  { %v1438_v41 = vpop.eup %1437 }
 0xf15   :  { %861 = vrot.lane.b32.xlu0 %v1438_v41, %s1565_s3 }
 0xf6b   :  { %v609_v45 = vpop.permute.xlu2 %608 }
 0xf6c   :  { %v611_v47 = vmul.f32 %v609_v45, %v606_v43 }
 0xf6e   :  { %v1818_v48 = vadd.f32 %v614_v46, %v611_v47 }
 0xf70   :  { %v621_v49 = vrot.slane %v1818_v48, 4 }
 0xf72   :  { %622 = vrot.lane.b32.xlu1 %v621_v49, %s1565_s3 }
 0xf87   :  { %v862_v51 = vpop.permute.xlu0 %861 }
 0xf88   :  { %v864_v52 = vmul.f32 %v862_v51, %v859_v50 }
 0xf8a   :  { %v868_v53 = vadd.f32 %v867_v15, %v864_v52 }
 0xf8c   :  { %v870_v54 = vrot.slane %v868_v53, 2  ;;  %v934_v26 = vrot.slane %v868_v53, 6 }
 0xf8e   :  { %871 = vrot.lane.b32.xlu2 %v870_v54, %s1565_s3 }
 0xfe4   :  { %v623_v55 = vpop.permute.xlu1 %622 }
 0xfe5   :  { %1352 = vmatmul.msk.f32.vlgmr.msra.gmra.mxu1 %vm120_vm7, %v623_v55 }
 0xfe6   :  { %1090 = vmatpush.msra.mxu1 %v1731_v38 }
 0xfe8   :  { %1091 = vmatpush.msra.mxu1 %v1733_v39  ;;  %v872_v56 = vpop.permute.xlu2 %871 }
 0xfea   :  { %1092 = vmatpush.msra.mxu1 %v1737_v35 }
 0xfec   :  { %1093 = vmatpush.msra.mxu1 %v1742_v40 }
 0xfed   :  { %1359 = vmatmul.msk.f32.vlgmr.msrb.gmra.mxu1 %vm120_vm7, %v872_v56 }
0x1062   :  { %v643_v57 = vpop.f32.mrf.mxu1 }
0x1063   :  { %v644_v16 = vadd.f32 %v1656_v7, %v643_v57 }
0x1065   :  { %v647_v17 = vrot.slane %v644_v16, 2 }
0x1067   :  { %v649_v21 = vadd.f32 %v647_v17, %v1714_v11 }
0x1069   :  { %v1353_v22 = vmul.f32 -1.442695, %v649_v21 }
0x106a   :  { %v892_v58 = vpop.f32.mrf.mxu1 }
0x106b   :  { %v893_v59 = vadd.f32 %v1774_v6, %v892_v58 }
0x106d   :  { %v896_v60 = vrot.slane %v893_v59, 4 }
0x106f   :  { %918 = vrot.lane.b32.xlu0 %v896_v60, %s1564_s20  ;;  %v898_v61 = vadd.f32 %v896_v60, %v1785_v9 }
0x1071   :  { %v1360_v62 = vmul.f32 -1.442695, %v898_v61 }
0x1073   :  { %1439 = vpow2.f32 %v1360_v62 }
0x1079   :  { %v1440_v38 = vpop.eup %1439 }
0x107a   :  { %v902_v39 = vadd.f32 1.0, %v1440_v38 }
0x107c   :  { %1441 = vrcp.f32 %v902_v39  ;;  %v914_v3 = vand.u32 2147483648, %v902_v39  ;;  %vm908_vm2 = vweird.f32 %v902_v39  ;;  %v912_v4 = vand.u32 2147483647, %v902_v39 }
0x107e   :  { %v915_v8 = vor.u32 1.1754944e-38, %v914_v3  ;;  %vm913_vm4 = vcmp.eq.f32.partialorder %v912_v4, 8.507059e+37 }
0x1082   :  { %v1442_v35 = vpop.eup %1441 }
0x1083   :  { %v904_v63 = vmul.f32 %v1442_v35, %v902_v39  ;;  %vm909_vm0 = vweird.f32 %v1442_v35 }
0x1084   :  { %vm910_vm3 = vmor %vm908_vm2, %vm909_vm0 }
0x1085   :  { %v905_v0 = vsub.f32 1.0, %v904_v63 }
0x1087   :  { %v906_v40 = vmul.f32 %v1442_v35, %v905_v0 }
0x1089   :  { %v907_v2 = vadd.f32 %v1442_v35, %v906_v40 }
0x108b   :  { %v911_v12 = vsel %vm910_vm3, %v1442_v35, %v907_v2 }
0x108c   :  { %v916_v14 = vsel %vm913_vm4, %v915_v8, %v911_v12 }
0x108d   :  { %v928_v27 = vsub.f32 1.0, %v916_v14  ;;  %v936_v30 = vmul.f32 %v934_v26, %v916_v14 }
0x10e1   :  { %v919_v13 = vpop.permute.xlu0 %918 }
0x10e2   :  { %v921_v15 = vmul.f32 %v919_v13, %v916_v14 }
0x10e4   :  { %923 = vrot.lane.b32.xlu1 %v921_v15, %s1564_s20 }
0x10ec   :  { %669 = vrot.lane.b32.xlu1 %v647_v17, %s1564_s20  ;;  %v685_v17 = vrot.slane %v1818_v48, 6 }
0x1156   :  { %v924_v18 = vpop.permute.xlu1 %923 }
0x1157   :  { %v926_v19 = vadd.f32 %v924_v18, %v1785_v9 }
0x1159   :  { %1443 = vtanh.f32 %v926_v19 }
0x115a   :  { %1445 = vpow2.f32 %v1353_v22 }
0x115e   :  { %v670_v43 = vpop.permute.xlu1 %669 }
0x115f   :  { %v1444_v20 = vpop.eup %1443 }
0x1160   :  { %930 = vrot.lane.b32.xlu2 %v1444_v20, %s1565_s3  ;;  %v1446_v23 = vpop.eup %1445 }
0x1161   :  { %v653_v24 = vadd.f32 1.0, %v1446_v23 }
0x1163   :  { %1447 = vrcp.f32 %v653_v24  ;;  %v665_v36 = vand.u32 2147483648, %v653_v24  ;;  %vm659_vm5 = vweird.f32 %v653_v24  ;;  %v663_v37 = vand.u32 2147483647, %v653_v24 }
0x1165   :  { %v666_v41 = vor.u32 1.1754944e-38, %v665_v36  ;;  %vm664_vm9 = vcmp.eq.f32.partialorder %v663_v37, 8.507059e+37 }
0x1169   :  { %v1448_v10 = vpop.eup %1447 }
0x116a   :  { %v655_v25 = vmul.f32 %v1448_v10, %v653_v24  ;;  %vm660_vm1 = vweird.f32 %v1448_v10 }
0x116b   :  { %vm661_vm8 = vmor %vm659_vm5, %vm660_vm1 }
0x116c   :  { %v656_v7 = vsub.f32 1.0, %v655_v25 }
0x116e   :  { %v657_v29 = vmul.f32 %v1448_v10, %v656_v7 }
0x1170   :  { %v658_v33 = vadd.f32 %v1448_v10, %v657_v29 }
0x1172   :  { %v662_v1 = vsel %vm661_vm8, %v1448_v10, %v658_v33 }
0x1173   :  { %v667_v44 = vsel %vm664_vm9, %v666_v41, %v662_v1 }
0x1174   :  { %v672_v45 = vmul.f32 %v670_v43, %v667_v44  ;;  %v679_v16 = vsub.f32 1.0, %v667_v44  ;;  %v687_v19 = vmul.f32 %v685_v17, %v667_v44 }
0x11ba   :  { %v931_v28 = vpop.permute.xlu2 %930 }
0x11bb   :  { %v933_v31 = vmul.f32 %v931_v28, %v928_v27 }
0x11bd   :  { %v937_v32 = vadd.f32 %v936_v30, %v933_v31 }
0x11bf   :  { %v939_v34 = vrot.slane %v937_v32, 4  ;;  %v1003_v35 = vrot.slane %v937_v32, 6 }
0x11c1   :  { %940 = vrot.lane.b32.xlu0 %v939_v34, %s1565_s3 }
0x11c9   :  { %674 = vrot.lane.b32.xlu0 %v672_v45, %s1564_s20 }
0x1233   :  { %v941_v46 = vpop.permute.xlu0 %940 }
0x1234   :  { %1361 = vmatmul.msk.f32.vlgmr.msrb.gmra.mxu3 %vm120_vm7, %v941_v46 }
0x123b   :  { %v675_v47 = vpop.permute.xlu0 %674 }
0x123c   :  { %v677_v51 = vadd.f32 %v675_v47, %v1714_v11 }
0x123e   :  { %1449 = vtanh.f32 %v677_v51 }
0x1244   :  { %v1450_v55 = vpop.eup %1449 }
0x12b7   :  { %v961_v49 = vpop.f32.mrf.mxu3 }
0x12b8   :  { %v962_v50 = vadd.f32 %v1774_v6, %v961_v49 }
0x12ba   :  { %v965_v52 = vrot.slane %v962_v50, 2 }
0x12bc   :  { %v967_v53 = vadd.f32 %v965_v52, %v1785_v9  ;;  %987 = vrot.lane.b32.xlu2 %v965_v52, %s1564_s20 }
0x12be   :  { %v1362_v54 = vmul.f32 -1.442695, %v967_v53 }
0x12c0   :  { %1451 = vpow2.f32 %v1362_v54 }
0x12c4   :  { %681 = vrot.lane.b32.xlu2 %v1450_v55, %s1565_s3 }
0x12c6   :  { %v1452_v56 = vpop.eup %1451 }
0x12c7   :  { %v971_v57 = vadd.f32 1.0, %v1452_v56 }
0x12c9   :  { %1453 = vrcp.f32 %v971_v57  ;;  %v983_v60 = vand.u32 2147483648, %v971_v57  ;;  %v981_v62 = vand.u32 2147483647, %v971_v57  ;;  %vm977_vm13 = vweird.f32 %v971_v57 }
0x12cb   :  { %v984_v39 = vor.u32 1.1754944e-38, %v983_v60  ;;  %vm982_vm15 = vcmp.eq.f32.partialorder %v981_v62, 8.507059e+37 }
0x12cc   :  { %617 = vrot.lane.b32.xlu2 %v1818_v48, %s1565_s3 }
0x12cf   :  { %v1454_v58 = vpop.eup %1453 }
0x12d0   :  { %v973_v59 = vmul.f32 %v1454_v58, %v971_v57  ;;  %vm978_vm6 = vweird.f32 %v1454_v58 }
0x12d1   :  { %vm979_vm14 = vmor %vm977_vm13, %vm978_vm6 }
0x12d2   :  { %v974_v11 = vsub.f32 1.0, %v973_v59 }
0x12d4   :  { %v975_v61 = vmul.f32 %v1454_v58, %v974_v11 }
0x12d6   :  { %v976_v38 = vadd.f32 %v1454_v58, %v975_v61 }
0x12d8   :  { %v980_v63 = vsel %vm979_vm14, %v1454_v58, %v976_v38 }
0x12d9   :  { %v985_v0 = vsel %vm982_vm15, %v984_v39, %v980_v63 }
0x12da   :  { %v1005_v40 = vmul.f32 %v1003_v35, %v985_v0 }
0x1316   :  { %v988_v2 = vpop.permute.xlu2 %987 }
0x1317   :  { %v990_v3 = vmul.f32 %v988_v2, %v985_v0 }
0x1319   :  { %992 = vrot.lane.b32.xlu1 %v990_v3, %s1564_s20 }
0x131e   :  { %v682_v4 = vpop.permute.xlu2 %681 }
0x131f   :  { %v684_v18 = vmul.f32 %v682_v4, %v679_v16 }
0x1321   :  { %544 = vrot.lane.b32.xlu1 %v1794_v42, %s1565_s3  ;;  %v688_v20 = vadd.f32 %v687_v19, %v684_v18  ;;  %v997_v42 = vsub.f32 1.0, %v985_v0 }
0x1326   :  { %v618_v12 = vpop.permute.xlu2 %617 }
0x1327   :  { %620 = vst.msk [vmem:[#allocation2 + $0x8] sm:$0x30] %vm332_vm11, %v618_v12 }
0x138b   :  { %v993_v8 = vpop.permute.xlu1 %992 }
0x138c   :  { %v995_v13 = vadd.f32 %v993_v8, %v1785_v9 }
0x138e   :  { %1455 = vtanh.f32 %v995_v13 }
0x1393   :  { %v545_v14 = vpop.permute.xlu1 %544 }
0x1394   :  { %v1456_v15 = vpop.eup %1455  ;;  %547 = vst.msk [vmem:[#allocation2 + $0x8] sm:$0xc] %vm258_vm10, %v545_v14 }
0x1395   :  { %999 = vrot.lane.b32.xlu0 %v1456_v15, %s1565_s3 }
0x139d   :  { %690 = vrot.lane.b32.xlu0 %v688_v20, %s1565_s3 }
0x1407   :  { %v1000_v21 = vpop.permute.xlu0 %999 }
0x1408   :  { %v1002_v22 = vmul.f32 %v1000_v21, %v997_v42 }
0x140a   :  { %v1006_v23 = vadd.f32 %v1005_v40, %v1002_v22 }
0x140c   :  { %v1008_v9 = vrot.slane %v1006_v23, 6 }
0x140e   :  { %1009 = vrot.lane.b32.xlu1 %v1008_v9, %s1565_s3 }
0x140f   :  { %v691_v24 = vpop.permute.xlu0 %690 }
0x1410   :  { %693 = vst.msk [vmem:[#allocation2 + $0x8] sm:$0xc0] %vm406_vm12, %v691_v24 }
0x1411   :  { %694 = vst.msk [vmem:[#allocation3 - $0x6] sm:$0xc0] %vm406_vm12, %v691_v24 }
0x1417   :  { %v696_v10 = vld [vmem:[#allocation2 + $0x8] sm:$0xff] }
0x1418   :  { %1355 = vmatmul.msk.f32.gmra.mxu2 %vm120_vm7, %v696_v10 }
0x1480   :  { %v1010_v48 = vpop.permute.xlu1 %1009 }
0x1481   :  { %1363 = vmatmul.msk.f32.vlgmr.msrb.gmra.mxu0 %vm120_vm7, %v1010_v48 }
0x149b   :  { %v735_v26 = vpop.f32.mrf.mxu2 }
0x149c   :  { %v1865_v27 = vadd.f32 %v1782_v5, %v735_v26 }
0x14fe   :  { %v1030_v25 = vpop.f32.mrf.mxu0 }
0x14ff   :  { %v1031_v7 = vadd.f32 %v1774_v6, %v1030_v25 }
0x1501   :  { %1054 = vrot.lane.b32.xlu2 %v1031_v7, %s1564_s20  ;;  %v1033_v28 = vadd.f32 %v1031_v7, %v1865_v27 }
0x1503   :  { %v1364_v29 = vmul.f32 -1.442695, %v1033_v28 }
0x1505   :  { %1457 = vpow2.f32 %v1364_v29 }
0x150b   :  { %v1458_v30 = vpop.eup %1457 }
0x150c   :  { %v1037_v31 = vadd.f32 1.0, %v1458_v30 }
0x150e   :  { %1459 = vrcp.f32 %v1037_v31  ;;  %v1049_v1 = vand.u32 2147483648, %v1037_v31  ;;  %vm1043_vm11 = vweird.f32 %v1037_v31  ;;  %v1047_v41 = vand.u32 2147483647, %v1037_v31 }
0x1510   :  { %v1050_v5 = vor.u32 1.1754944e-38, %v1049_v1  ;;  %vm1048_vm2 = vcmp.eq.f32.partialorder %v1047_v41, 8.507059e+37 }
0x1514   :  { %v1460_v32 = vpop.eup %1459 }
0x1515   :  { %v1039_v33 = vmul.f32 %v1460_v32, %v1037_v31  ;;  %vm1044_vm10 = vweird.f32 %v1460_v32 }
0x1516   :  { %vm1045_vm0 = vmor %vm1043_vm11, %vm1044_vm10 }
0x1517   :  { %v1040_v34 = vsub.f32 1.0, %v1039_v33 }
0x1519   :  { %v1041_v36 = vmul.f32 %v1460_v32, %v1040_v34 }
0x151b   :  { %v1042_v37 = vadd.f32 %v1460_v32, %v1041_v36 }
0x151d   :  { %v1046_v43 = vsel %vm1045_vm0, %v1460_v32, %v1042_v37  ;;  %vm1316_vm0 = vcmask 35840  }
0x151e   :  { %v1051_v45 = vsel %vm1048_vm2, %v1050_v5, %v1046_v43 }
0x151f   :  { %v1064_v51 = vsub.f32 1.0, %v1051_v45  ;;  %v1071_v53 = vmul.f32 %v1051_v45, %v1008_v9 }
0x155b   :  { %v1055_v44 = vpop.permute.xlu2 %1054 }
0x155c   :  { %v1057_v46 = vmul.f32 %v1055_v44, %v1051_v45 }
0x155e   :  { %1059 = vrot.lane.b32.xlu0 %v1057_v46, %s1564_s20 }
0x15d0   :  { %v1060_v47 = vpop.permute.xlu0 %1059 }
0x15d1   :  { %v1062_v49 = vadd.f32 %v1060_v47, %v1865_v27 }
0x15d3   :  { %1461 = vtanh.f32 %v1062_v49 }
0x15d9   :  { %v1462_v50 = vpop.eup %1461 }
0x15da   :  { %1066 = vrot.lane.b32.xlu1 %v1462_v50, %s1565_s3 }
0x164c   :  { %v1067_v52 = vpop.permute.xlu1 %1066 }
0x164d   :  { %v1069_v54 = vmul.f32 %v1067_v52, %v1064_v51 }
0x164f   :  { %v1072_v55 = vadd.f32 %v1071_v53, %v1069_v54 }
0x1651   :  { %1074 = vrot.lane.b32.xlu2 %v1072_v55, %s1565_s3  ;;  %v1137_v17 = vrot.slane %v1072_v55, 6 }
0x16ab   :  { %v1075_v56 = vpop.permute.xlu2 %1074 }
0x16ac   :  { %1365 = vmatmul.msk.f32.vlgmr.msra.gmra.mxu1 %vm120_vm7, %v1075_v56 }
0x1729   :  { %v1095_v57 = vpop.f32.mrf.mxu1 }
0x172a   :  { %v1096_v58 = vadd.f32 %v1774_v6, %v1095_v57 }
0x172c   :  { %v1099_v59 = vrot.slane %v1096_v58, 6 }
0x172e   :  { %1121 = vrot.lane.b32.xlu0 %v1099_v59, %s1564_s20  ;;  %v1101_v11 = vadd.f32 %v1099_v59, %v1865_v27 }
0x1730   :  { %v1366_v60 = vmul.f32 -1.442695, %v1101_v11 }
0x1732   :  { %1463 = vpow2.f32 %v1366_v60 }
0x1738   :  { %v1464_v61 = vpop.eup %1463 }
0x1739   :  { %v1105_v62 = vadd.f32 1.0, %v1464_v61 }
0x173b   :  { %1465 = vrcp.f32 %v1105_v62  ;;  %v1117_v40 = vand.u32 2147483648, %v1105_v62  ;;  %vm1111_vm4 = vweird.f32 %v1105_v62  ;;  %v1115_v2 = vand.u32 2147483647, %v1105_v62 }
0x173d   :  { %v1118_v4 = vor.u32 1.1754944e-38, %v1117_v40  ;;  %vm1116_vm5 = vcmp.eq.f32.partialorder %v1115_v2, 8.507059e+37 }
0x1741   :  { %v1466_v38 = vpop.eup %1465 }
0x1742   :  { %v1107_v39 = vmul.f32 %v1466_v38, %v1105_v62  ;;  %vm1112_vm3 = vweird.f32 %v1466_v38 }
0x1743   :  { %vm1113_vm1 = vmor %vm1111_vm4, %vm1112_vm3 }
0x1744   :  { %v1108_v35 = vsub.f32 1.0, %v1107_v39 }
0x1746   :  { %v1109_v63 = vmul.f32 %v1466_v38, %v1108_v35 }
0x1748   :  { %v1110_v0 = vadd.f32 %v1466_v38, %v1109_v63 }
0x174a   :  { %v1114_v3 = vsel %vm1113_vm1, %v1466_v38, %v1110_v0 }
0x174b   :  { %v1119_v8 = vsel %vm1116_vm5, %v1118_v4, %v1114_v3 }
0x174c   :  { %v1131_v18 = vsub.f32 1.0, %v1119_v8  ;;  %v1139_v42 = vmul.f32 %v1137_v17, %v1119_v8 }
0x17a0   :  { %v1122_v12 = vpop.permute.xlu0 %1121 }
0x17a1   :  { %v1124_v13 = vmul.f32 %v1122_v12, %v1119_v8 }
0x17a3   :  { %1126 = vrot.lane.b32.xlu1 %v1124_v13, %s1564_s20 }
0x1815   :  { %v1127_v14 = vpop.permute.xlu1 %1126 }
0x1816   :  { %v1129_v15 = vadd.f32 %v1127_v14, %v1865_v27 }
0x1818   :  { %1467 = vtanh.f32 %v1129_v15 }
0x181e   :  { %v1468_v16 = vpop.eup %1467 }
0x181f   :  { %1133 = vrot.lane.b32.xlu2 %v1468_v16, %s1565_s3 }
0x1879   :  { %v1134_v19 = vpop.permute.xlu2 %1133 }
0x187a   :  { %v1136_v20 = vmul.f32 %v1134_v19, %v1131_v18 }
0x187c   :  { %v1140_v21 = vadd.f32 %v1139_v42, %v1136_v20  ;;  %v1288_v20 = vld [vmem:[%s1925_s9 + $0x18] sm:$0xff]  ;;  %v1287_v42 = vld [vmem:[%s1925_s9 + $0x10] sm:$0xff] }
0x187d   :  { %1308 = vmatpush.msra.mxu0 %v1288_v20 }
0x187e   :  { %v1142_v22 = vrot.slane %v1140_v21, 2  ;;  %v1206_v46 = vrot.slane %v1140_v21, 6  ;;  %v1285_v21 = vld [vmem:[%s1925_s9] sm:$0xff] }
0x187f   :  { %1309 = vmatpush.msra.mxu0 %v1287_v42 }
0x1880   :  { %1143 = vrot.lane.b32.xlu0 %v1142_v22, %s1565_s3 }
0x18f2   :  { %v1144_v23 = vpop.permute.xlu0 %1143 }
0x18f3   :  { %1367 = vmatmul.msk.f32.vlgmr.msrb.gmra.mxu2 %vm120_vm7, %v1144_v23 }
0x1976   :  { %v1164_v9 = vpop.f32.mrf.mxu2 }
0x1977   :  { %v1165_v24 = vadd.f32 %v1774_v6, %v1164_v9  ;;  %v1384_v9 = vld [vmem:[%s1926_s10] ss:$0 sm:$0xff] }
0x1979   :  { %v1168_v10 = vrot.slane %v1165_v24, 4 }
0x197b   :  { %1190 = vrot.lane.b32.xlu1 %v1168_v10, %s1564_s20  ;;  %v1170_v48 = vadd.f32 %v1168_v10, %v1865_v27 }
0x197d   :  { %v1368_v25 = vmul.f32 -1.442695, %v1170_v48 }
0x197f   :  { %1469 = vpow2.f32 %v1368_v25 }
0x1985   :  { %v1470_v7 = vpop.eup %1469 }
0x1986   :  { %v1174_v26 = vadd.f32 1.0, %v1470_v7 }
0x1988   :  { %1471 = vrcp.f32 %v1174_v26  ;;  %v1186_v33 = vand.u32 2147483648, %v1174_v26  ;;  %vm1180_vm9 = vweird.f32 %v1174_v26  ;;  %v1184_v34 = vand.u32 2147483647, %v1174_v26 }
0x198a   :  { %v1187_v37 = vor.u32 1.1754944e-38, %v1186_v33  ;;  %vm1185_vm13 = vcmp.eq.f32.partialorder %v1184_v34, 8.507059e+37 }
0x198e   :  { %v1472_v28 = vpop.eup %1471 }
0x198f   :  { %v1176_v29 = vmul.f32 %v1472_v28, %v1174_v26  ;;  %vm1181_vm8 = vweird.f32 %v1472_v28 }
0x1990   :  { %vm1182_vm6 = vmor %vm1180_vm9, %vm1181_vm8 }
0x1991   :  { %v1177_v30 = vsub.f32 1.0, %v1176_v29 }
0x1993   :  { %v1178_v31 = vmul.f32 %v1472_v28, %v1177_v30 }
0x1995   :  { %v1179_v32 = vadd.f32 %v1472_v28, %v1178_v31 }
0x1997   :  { %v1183_v36 = vsel %vm1182_vm6, %v1472_v28, %v1179_v32 }
0x1998   :  { %v1188_v41 = vsel %vm1185_vm13, %v1187_v37, %v1183_v36 }
0x1999   :  { %v1200_v47 = vsub.f32 1.0, %v1188_v41  ;;  %v1208_v50 = vmul.f32 %v1206_v46, %v1188_v41 }
0x19ed   :  { %v1191_v1 = vpop.permute.xlu1 %1190 }
0x19ee   :  { %v1193_v43 = vmul.f32 %v1191_v1, %v1188_v41 }
0x19f0   :  { %1195 = vrot.lane.b32.xlu2 %v1193_v43, %s1564_s20 }
0x1a4a   :  { %v1196_v5 = vpop.permute.xlu2 %1195 }
0x1a4b   :  { %v1198_v44 = vadd.f32 %v1196_v5, %v1865_v27 }
0x1a4d   :  { %1473 = vtanh.f32 %v1198_v44 }
0x1a53   :  { %v1474_v45 = vpop.eup %1473 }
0x1a54   :  { %1202 = vrot.lane.b32.xlu0 %v1474_v45, %s1565_s3 }
0x1ac6   :  { %v1203_v49 = vpop.permute.xlu0 %1202 }
0x1ac7   :  { %v1205_v51 = vmul.f32 %v1203_v49, %v1200_v47 }
0x1ac9   :  { %v1209_v52 = vadd.f32 %v1208_v50, %v1205_v51 }
0x1acb   :  { %v1211_v53 = vrot.slane %v1209_v52, 4  ;;  %v1275_v40 = vrot.slane %v1209_v52, 6 }
0x1acd   :  { %1212 = vrot.lane.b32.xlu1 %v1211_v53, %s1565_s3 }
0x1b3f   :  { %v1213_v54 = vpop.permute.xlu1 %1212 }
0x1b40   :  { %1369 = vmatmul.msk.f32.vlgmr.msra.gmra.mxu3 %vm120_vm7, %v1213_v54 }
0x1bc3   :  { %v1233_v55 = vpop.f32.mrf.mxu3 }
0x1bc4   :  { %v1234_v56 = vadd.f32 %v1774_v6, %v1233_v55 }
0x1bc6   :  { %v1237_v57 = vrot.slane %v1234_v56, 2 }
0x1bc8   :  { %v1239_v58 = vadd.f32 %v1237_v57, %v1865_v27  ;;  %1259 = vrot.lane.b32.xlu2 %v1237_v57, %s1564_s20 }
0x1bca   :  { %v1370_v59 = vmul.f32 -1.442695, %v1239_v58 }
0x1bcc   :  { %1475 = vpow2.f32 %v1370_v59 }
0x1bd2   :  { %v1476_v11 = vpop.eup %1475 }
0x1bd3   :  { %v1243_v60 = vadd.f32 1.0, %v1476_v11 }
0x1bd5   :  { %1477 = vrcp.f32 %v1243_v60  ;;  %v1255_v39 = vand.u32 2147483648, %v1243_v60  ;;  %v1253_v63 = vand.u32 2147483647, %v1243_v60  ;;  %vm1249_vm15 = vweird.f32 %v1243_v60 }
0x1bd7   :  { %v1256_v6 = vor.u32 1.1754944e-38, %v1255_v39  ;;  %vm1254_vm11 = vcmp.eq.f32.partialorder %v1253_v63, 8.507059e+37 }
0x1bdb   :  { %v1478_v61 = vpop.eup %1477 }
0x1bdc   :  { %v1245_v62 = vmul.f32 %v1478_v61, %v1243_v60  ;;  %vm1250_vm14 = vweird.f32 %v1478_v61 }
0x1bdd   :  { %vm1251_vm10 = vmor %vm1249_vm15, %vm1250_vm14 }
0x1bde   :  { %v1246_v38 = vsub.f32 1.0, %v1245_v62 }
0x1be0   :  { %v1247_v35 = vmul.f32 %v1478_v61, %v1246_v38 }
0x1be2   :  { %v1248_v0 = vadd.f32 %v1478_v61, %v1247_v35 }
0x1be4   :  { %v1252_v2 = vsel %vm1251_vm10, %v1478_v61, %v1248_v0 }
0x1be5   :  { %v1257_v3 = vsel %vm1254_vm11, %v1256_v6, %v1252_v2 }
0x1be6   :  { %v1277_v4 = vmul.f32 %v1275_v40, %v1257_v3  ;;  %v1269_v16 = vsub.f32 1.0, %v1257_v3 }
0x1c22   :  { %v1260_v12 = vpop.permute.xlu2 %1259 }
0x1c23   :  { %v1262_v8 = vmul.f32 %v1260_v12, %v1257_v3 }
0x1c25   :  { %1264 = vrot.lane.b32.xlu0 %v1262_v8, %s1564_s20 }
0x1c97   :  { %v1265_v13 = vpop.permute.xlu0 %1264 }
0x1c98   :  { %v1267_v14 = vadd.f32 %v1265_v13, %v1865_v27  ;;  %v1286_v27 = vld [vmem:[%s1925_s9 + $0x8] sm:$0xff] }
0x1c99   :  { %1310 = vmatpush.msra.mxu0 %v1286_v27 }
0x1c9a   :  { %1479 = vtanh.f32 %v1267_v14 }
0x1c9b   :  { %1311 = vmatpush.msra.mxu0 %v1285_v21 }
0x1ca0   :  { %v1480_v15 = vpop.eup %1479 }
0x1ca1   :  { %1271 = vrot.lane.b32.xlu1 %v1480_v15, %s1565_s3 }
0x1d13   :  { %v1272_v17 = vpop.permute.xlu1 %1271 }
0x1d14   :  { %v1274_v18 = vmul.f32 %v1272_v17, %v1269_v16 }
0x1d16   :  { %v1278_v19 = vadd.f32 %v1277_v4, %v1274_v18 }
0x1d18   :  { %1280 = vrot.lane.b32.xlu2 %v1278_v19, %s1565_s3 }
0x1d72   :  { %v1281_v22 = vpop.permute.xlu2 %1280 }
0x1d73   :  { %1283 = vst.msk [vmem:[#allocation3 - $0x4] sm:$0xc0] %vm406_vm12, %v1281_v22 }
0x1d7a   :  { %v1284_v23 = vld [vmem:[#allocation3] sm:$0xf] }
0x1d7b   :  { %1371 = vmatmul.msk.f32.vlgmr.msra.gmra.mxu0 %vm120_vm7, %v1284_v23 }
0x1df8   :  { %v1313_v24 = vpop.f32.mrf.mxu0 }
0x1df9   :  { %v1314_v10 = vadd.f32 %v1384_v9, %v1313_v24 }
0x1dfb   :  { %1317 = vst.msk [vmem:[#allocation9] sm:$0xf] %vm1316_vm0, %v1314_v10 }
0x1dfc   :  { %1328 = dma.vmem_to_hbm [thread:$0]  %s1324_s15, 64, %s1326_s18, [#allocation6]  }
0x1dfd   :  { %1557 = dma.done.wait [#allocation6], 64  }
0x1dfe   :  { %1558 = vsyncadd [#allocation6], 4294967232 }
0x1dff   :  { %1333 = vsyncpa [#allocation5], 1 }
0x1e00   :  { %1334 = vsyncpa [#allocation8], 1 }
0x1e01   :  { %1335 = vsyncpa [#allocation6], 1 }

</bundles_post_ra>
